<compile_context>
chip_gen: v5e
topology: v5e:2x2
jax: 0.10.0
libtpu: 0.0.40
codegen_flags: <defaults>
</compile_context>

<pallas_src>
import jax
import jax.numpy as jnp
from jax.experimental import pallas as pl
from jax.experimental.pallas import tpu as pltpu

# ---- small T5 config --------------------------------------------------------
B, S = 2, 8            # batch, sequence length
T = B * S              # flattened token count
D_MODEL = 32           # hidden size
N_HEADS = 4
D_KV = 8               # per-head dim
HDK = N_HEADS * D_KV   # concat-heads width (== D_MODEL)
D_FF = 64              # feed-forward inner dim
N_LAYERS = 2
VOCAB = 64
NUM_BUCKETS = 32       # T5 relative attention buckets
MAX_DISTANCE = 128
EPS = 1e-6             # T5 LayerNorm (RMSNorm) eps


# ---- in-kernel helpers ------------------------------------------------------
def _rms_norm(x, w):
    # T5 LayerNorm: no mean subtraction, no bias.
    var = jnp.mean(x * x, axis=-1, keepdims=True)
    return x * jax.lax.rsqrt(var + EPS) * w


# ---- fused whole-encoder kernel (single invocation, layers unrolled) --------
def t5_encoder_kernel(h_ref, bias_ref, ln1_ref, ln2_ref, wqkv_ref, wo_ref,
                      wi_ref, wf_ref, fln_ref, out_ref, ctx_sc):
    x = h_ref[...]                                            # (T, D) f32 residual stream

    for layer in range(N_LAYERS):                             # static unroll (N_LAYERS=2)
        # ---- self-attention sublayer (pre-RMSNorm; T5: no 1/sqrt(dk) scaling) ----
        xn = _rms_norm(x, ln1_ref[layer]).astype(jnp.bfloat16)            # (T, D) bf16
        # one fused QKV matmul: (T, D) x (D, 3*H*Dk) -> (T, 3*H*Dk) f32
        qkv = jnp.dot(xn, wqkv_ref[layer],
                      preferred_element_type=jnp.float32)

        for h in range(N_HEADS):                               # static unroll (4 heads)
            o = h * D_KV
            # static lane slices + free outer splits (B*S, Dk) -> (B, S, Dk)
            q_h = qkv[:, o:o + D_KV].reshape(B, S, D_KV)
            k_h = qkv[:, HDK + o:HDK + o + D_KV].reshape(B, S, D_KV)
            v_h = qkv[:, 2 * HDK + o:2 * HDK + o + D_KV].reshape(B, S, D_KV)

            # scores + softmax in f32 (bias already includes the -1e9 mask)
            s = jnp.einsum('bqd,bkd->bqk', q_h, k_h,
                           preferred_element_type=jnp.float32) + bias_ref[h]
            m = jnp.max(s, axis=-1, keepdims=True)
            p = jnp.exp(s - m)
            denom = jnp.sum(p, axis=-1, keepdims=True)
            a = p * pl.reciprocal(denom, approx=True)          # EUP, not VALU divide

            c = jnp.einsum('bqk,bkd->bqd', a.astype(jnp.bfloat16),
                           v_h.astype(jnp.bfloat16),
                           preferred_element_type=jnp.float32)  # (B, S, Dk)
            # concat heads via static lane-slice stores into VMEM scratch
            ctx_sc[:, o:o + D_KV] = c.reshape(T, D_KV)

        # single concat-heads output projection (replaces per-head proj + sum)
        attn_out = jnp.dot(ctx_sc[...].astype(jnp.bfloat16), wo_ref[layer],
                           preferred_element_type=jnp.float32)  # (T, D)
        x = x + attn_out                                        # residual add (f32)

        # ---- feed-forward sublayer (pre-RMSNorm, ReLU) ----
        xn2 = _rms_norm(x, ln2_ref[layer]).astype(jnp.bfloat16)
        ffw = jnp.maximum(
            jnp.dot(xn2, wi_ref[layer], preferred_element_type=jnp.float32), 0.0)
        ff = jnp.dot(ffw.astype(jnp.bfloat16), wf_ref[layer],
                     preferred_element_type=jnp.float32)
        x = x + ff

    # ---- final RMSNorm ----
    out_ref[...] = _rms_norm(x, fln_ref[...])


def run_encoder(h2d, bias_hbss, p):
    # Single pallas_call, no grid: every input is a full VMEM block and the
    # layer loop runs unrolled inside the kernel -> no per-layer grid-step
    # overhead. Total resident data is a few tens of KiB, far under VMEM on
    # v5e/v6e/v7x, so no vmem_limit override is needed.
    return pl.pallas_call(
        t5_encoder_kernel,
        out_shape=jax.ShapeDtypeStruct((T, D_MODEL), jnp.float32),
        scratch_shapes=[pltpu.VMEM((T, HDK), jnp.float32)],   # concat-heads ctx buffer
    )(h2d, bias_hbss, p["ln1"], p["ln2"], p["wqkv"], p["wo"],
      p["wi"], p["wf"], p["final_ln"])


# ---- glue: relative position bias (plain JAX, scalar/gather-heavy) ----------
def relative_position_bucket(rel_pos, num_buckets=NUM_BUCKETS,
                             max_distance=MAX_DISTANCE):
    # bidirectional (encoder) bucketing, matches HF T5
    num_buckets = num_buckets // 2
    ret = (rel_pos > 0).astype(jnp.int32) * num_buckets
    n = jnp.abs(rel_pos)
    max_exact = num_buckets // 2
    is_small = n < max_exact
    n_safe = jnp.maximum(n, 1).astype(jnp.float32)
    val_if_large = max_exact + (
        jnp.log(n_safe / max_exact) / jnp.log(max_distance / max_exact)
        * (num_buckets - max_exact)).astype(jnp.int32)
    val_if_large = jnp.minimum(val_if_large, num_buckets - 1)
    return ret + jnp.where(is_small, n, val_if_large)


def compute_position_bias(rel_emb, seq_len):
    ctx = jnp.arange(seq_len)[:, None]
    mem = jnp.arange(seq_len)[None, :]
    buckets = relative_position_bucket(mem - ctx)        # (S, S)
    values = rel_emb[buckets]                            # (S, S, H)
    return jnp.transpose(values, (2, 0, 1))[None]        # (1, H, S, S)


# ---- parameters (deterministic, synthetic; per-layer weights stacked) -------
def init_params(key):
    ks = jax.random.split(key, 10)
    scale = 0.05
    bf = jnp.bfloat16
    # fused QKV weight: columns = [Q heads | K heads | V heads], head-major
    wq = jax.random.normal(ks[4], (N_LAYERS, D_MODEL, HDK)) * scale
    wk = jax.random.normal(ks[5], (N_LAYERS, D_MODEL, HDK)) * scale
    wv = jax.random.normal(ks[6], (N_LAYERS, D_MODEL, HDK)) * scale
    return {
        "embed": jax.random.normal(ks[0], (VOCAB, D_MODEL), jnp.float32) * scale,
        "rel_emb": jax.random.normal(ks[1], (NUM_BUCKETS, N_HEADS),
                                     jnp.float32) * scale,
        "final_ln": jnp.ones((1, D_MODEL), jnp.float32),
        "ln1": 1.0 + 0.1 * jax.random.normal(ks[2], (N_LAYERS, 1, D_MODEL)),
        "ln2": 1.0 + 0.1 * jax.random.normal(ks[3], (N_LAYERS, 1, D_MODEL)),
        "wqkv": jnp.concatenate([wq, wk, wv], axis=-1).astype(bf),  # (L, D, 3*HDK)
        "wo": (jax.random.normal(ks[7], (N_LAYERS, HDK, D_MODEL))
               * scale).astype(bf),                                  # (L, H*Dk, D)
        "wi": (jax.random.normal(ks[8], (N_LAYERS, D_MODEL, D_FF))
               * scale).astype(bf),
        "wf": (jax.random.normal(ks[9], (N_LAYERS, D_FF, D_MODEL))
               * scale).astype(bf),
    }


# ---- full encoder forward (mirrors T5Encoder.forward semantics) -------------
@jax.jit
def t5_encoder_forward(input_ids, attention_mask, params):
    # embedding lookup (glue)
    h = params["embed"][input_ids].astype(jnp.float32)               # (B, S, D)
    # extended attention mask + shared relative position bias (glue)
    ext_mask = (1.0 - attention_mask.astype(jnp.float32))[:, None, None, :] * -1e9
    bias = compute_position_bias(params["rel_emb"], S) + ext_mask     # (B, H, S, S)
    bias_hbss = jnp.transpose(bias, (1, 0, 2, 3))                     # (H, B, S, S)
    # hot path: whole encoder (all layers + final norm) in one Pallas kernel
    out = run_encoder(h.reshape(T, D_MODEL), bias_hbss, params)       # (B*S, D)
    return out.reshape(B, S, D_MODEL)  # == BaseModelOutput.last_hidden_state


# ---- pure-JAX reference (same math, exact reciprocal) for a tolerance check -
def t5_encoder_reference(input_ids, attention_mask, params):
    h = params["embed"][input_ids].astype(jnp.float32)
    ext_mask = (1.0 - attention_mask.astype(jnp.float32))[:, None, None, :] * -1e9
    bias = compute_position_bias(params["rel_emb"], S) + ext_mask
    bias_hbss = jnp.transpose(bias, (1, 0, 2, 3))
    x = h.reshape(T, D_MODEL)
    for layer in range(N_LAYERS):
        xn = _rms_norm(x, params["ln1"][layer]).astype(jnp.bfloat16)
        qkv = jnp.dot(xn, params["wqkv"][layer],
                      preferred_element_type=jnp.float32)
        ctx = jnp.zeros((T, HDK), jnp.float32)
        for hh in range(N_HEADS):
            o = hh * D_KV
            q_h = qkv[:, o:o + D_KV].reshape(B, S, D_KV)
            k_h = qkv[:, HDK + o:HDK + o + D_KV].reshape(B, S, D_KV)
            v_h = qkv[:, 2 * HDK + o:2 * HDK + o + D_KV].reshape(B, S, D_KV)
            s = jnp.einsum('bqd,bkd->bqk', q_h, k_h,
                           preferred_element_type=jnp.float32) + bias_hbss[hh]
            a = jax.nn.softmax(s, axis=-1)
            c = jnp.einsum('bqk,bkd->bqd', a.astype(jnp.bfloat16),
                           v_h.astype(jnp.bfloat16),
                           preferred_element_type=jnp.float32)
            ctx = ctx.at[:, o:o + D_KV].set(c.reshape(T, D_KV))
        x = x + jnp.dot(ctx.astype(jnp.bfloat16), params["wo"][layer],
                        preferred_element_type=jnp.float32)
        xn2 = _rms_norm(x, params["ln2"][layer]).astype(jnp.bfloat16)
        ffw = jnp.maximum(jnp.dot(xn2, params["wi"][layer],
                                  preferred_element_type=jnp.float32), 0.0)
        x = x + jnp.dot(ffw.astype(jnp.bfloat16), params["wf"][layer],
                        preferred_element_type=jnp.float32)
    return _rms_norm(x, params["final_ln"]).reshape(B, S, D_MODEL)


if __name__ == "__main__":
    key = jax.random.PRNGKey(0)
    pkey, ikey = jax.random.split(key)
    params = init_params(pkey)

    input_ids = jax.random.randint(ikey, (B, S), 0, VOCAB, dtype=jnp.int32)
    attention_mask = jnp.ones((B, S), jnp.int32).at[1, -2:].set(0)  # pad tail of batch 1

    out = t5_encoder_forward(input_ids, attention_mask, params)
    out = jax.block_until_ready(out)
    assert out.shape == (B, S, D_MODEL)
    assert bool(jnp.all(jnp.isfinite(out)))

    # Tolerance check vs. pure-JAX reference: deviations come only from the
    # approximate (EUP) softmax reciprocal and MXU accumulation order.
    ref = t5_encoder_reference(input_ids, attention_mask, params)
    assert bool(jnp.allclose(out, ref, rtol=2e-2, atol=2e-2))
    # TODO(synk): original module returns an opaque ONNX session's output; here we
    # reproduce standard T5 encoder semantics with synthetic deterministic weights.
    print("KERNEL_OK")
</pallas_src>

<mosaic_0001>
module attributes {stable_mosaic.version = 11 : i64} {
  func.func @t5_encoder_kernel(%arg0: memref<16x32xf32, #tpu.memory_space<vmem>>, %arg1: memref<4x2x8x8xf32, #tpu.memory_space<vmem>>, %arg2: memref<2x1x32xf32, #tpu.memory_space<vmem>>, %arg3: memref<2x1x32xf32, #tpu.memory_space<vmem>>, %arg4: memref<2x32x96xbf16, #tpu.memory_space<vmem>>, %arg5: memref<2x32x32xbf16, #tpu.memory_space<vmem>>, %arg6: memref<2x32x64xbf16, #tpu.memory_space<vmem>>, %arg7: memref<2x64x32xbf16, #tpu.memory_space<vmem>>, %arg8: memref<1x32xf32, #tpu.memory_space<vmem>>, %arg9: memref<16x32xf32, #tpu.memory_space<vmem>>, %arg10: memref<16x32xf32, #tpu.memory_space<vmem>>) attributes {dimension_semantics = [], scalar_prefetch = 0 : i64, scratch_operands = 1 : i64, tpu.core_type = #tpu.core_type<tc>} {
    %c0 = arith.constant 0 : index
    %c0_0 = arith.constant 0 : index
    %0 = vector.load %arg0[%c0, %c0_0] : memref<16x32xf32, #tpu.memory_space<vmem>>, vector<16x32xf32>
    %c0_1 = arith.constant 0 : index
    %c0_2 = arith.constant 0 : index
    %c0_3 = arith.constant 0 : index
    %1 = vector.load %arg2[%c0_1, %c0_2, %c0_3] : memref<2x1x32xf32, #tpu.memory_space<vmem>>, vector<1x1x32xf32>
    %2 = vector.shape_cast %1 : vector<1x1x32xf32> to vector<1x32xf32>
    %3 = arith.mulf %0, %0 : vector<16x32xf32>
    %cst = arith.constant dense<0.000000e+00> : vector<16xf32>
    %4 = vector.multi_reduction <add>, %3, %cst [1] : vector<16x32xf32> to vector<16xf32>
    %5 = vector.shape_cast %4 : vector<16xf32> to vector<16x1xf32>
    %cst_4 = arith.constant 3.200000e+01 : f32
    %6 = vector.broadcast %cst_4 : f32 to vector<16x1xf32>
    %7 = arith.divf %5, %6 : vector<16x1xf32>
    %cst_5 = arith.constant 9.99999997E-7 : f32
    %8 = vector.broadcast %cst_5 : f32 to vector<16x1xf32>
    %9 = arith.addf %7, %8 : vector<16x1xf32>
    %10 = math.rsqrt %9 : vector<16x1xf32>
    %11 = vector.broadcast %10 : vector<16x1xf32> to vector<16x32xf32>
    %12 = arith.mulf %0, %11 : vector<16x32xf32>
    %13 = vector.broadcast %2 : vector<1x32xf32> to vector<16x32xf32>
    %14 = arith.mulf %12, %13 : vector<16x32xf32>
    %15 = arith.truncf %14 : vector<16x32xf32> to vector<16x32xbf16>
    %c0_6 = arith.constant 0 : index
    %c0_7 = arith.constant 0 : index
    %c0_8 = arith.constant 0 : index
    %16 = vector.load %arg4[%c0_6, %c0_7, %c0_8] : memref<2x32x96xbf16, #tpu.memory_space<vmem>>, vector<1x32x96xbf16>
    %17 = vector.shape_cast %16 : vector<1x32x96xbf16> to vector<32x96xbf16>
    %cst_9 = arith.constant dense<0.000000e+00> : vector<16x96xf32>
    %18 = tpu.matmul %15, %17, %cst_9 {dimension_numbers = #tpu.dot_dimension_numbers<[1], [0], [0], [1], [0, 0, 1, 1], [], []>} : vector<16x32xbf16>, vector<32x96xbf16>, vector<16x96xf32> -> vector<16x96xf32>
    %19 = vector.extract_strided_slice %18 {offsets = [0, 0], sizes = [16, 8], strides = [1, 1]} : vector<16x96xf32> to vector<16x8xf32>
    %20 = vector.shape_cast %19 : vector<16x8xf32> to vector<2x8x8xf32>
    %21 = vector.extract_strided_slice %18 {offsets = [0, 32], sizes = [16, 8], strides = [1, 1]} : vector<16x96xf32> to vector<16x8xf32>
    %22 = vector.shape_cast %21 : vector<16x8xf32> to vector<2x8x8xf32>
    %23 = vector.extract_strided_slice %18 {offsets = [0, 64], sizes = [16, 8], strides = [1, 1]} : vector<16x96xf32> to vector<16x8xf32>
    %24 = vector.shape_cast %23 : vector<16x8xf32> to vector<2x8x8xf32>
    "tpu.trace_start"() <{level = 10 : i32, message = "bqd,bkd->bqk"}> : () -> ()
    %cst_10 = arith.constant dense<0.000000e+00> : vector<2x8x8xf32>
    %25 = tpu.matmul %20, %22, %cst_10 {dimension_numbers = #tpu.dot_dimension_numbers<[2], [2], [1], [1], [0, 0, 0, 1, 1, 1], [0], [0]>} : vector<2x8x8xf32>, vector<2x8x8xf32>, vector<2x8x8xf32> -> vector<2x8x8xf32>
    "tpu.trace_stop"() : () -> ()
    %c0_11 = arith.constant 0 : index
    %c0_12 = arith.constant 0 : index
    %c0_13 = arith.constant 0 : index
    %c0_14 = arith.constant 0 : index
    %26 = vector.load %arg1[%c0_11, %c0_12, %c0_13, %c0_14] : memref<4x2x8x8xf32, #tpu.memory_space<vmem>>, vector<1x2x8x8xf32>
    %27 = vector.shape_cast %26 : vector<1x2x8x8xf32> to vector<2x8x8xf32>
    %28 = arith.addf %25, %27 : vector<2x8x8xf32>
    %cst_15 = arith.constant dense<0xFF800000> : vector<2x8xf32>
    %29 = vector.multi_reduction <maximumf>, %28, %cst_15 [2] : vector<2x8x8xf32> to vector<2x8xf32>
    %30 = vector.shape_cast %29 : vector<2x8xf32> to vector<2x8x1xf32>
    %31 = vector.broadcast %30 : vector<2x8x1xf32> to vector<2x8x8xf32>
    %32 = arith.subf %28, %31 : vector<2x8x8xf32>
    %33 = math.exp %32 : vector<2x8x8xf32>
    %cst_16 = arith.constant dense<0.000000e+00> : vector<2x8xf32>
    %34 = vector.multi_reduction <add>, %33, %cst_16 [2] : vector<2x8x8xf32> to vector<2x8xf32>
    %35 = vector.shape_cast %34 : vector<2x8xf32> to vector<2x8x1xf32>
    %36 = tpu.reciprocal %35 {approx = true} : vector<2x8x1xf32> -> vector<2x8x1xf32>
    %37 = vector.broadcast %36 : vector<2x8x1xf32> to vector<2x8x8xf32>
    %38 = arith.mulf %33, %37 : vector<2x8x8xf32>
    %39 = arith.truncf %38 : vector<2x8x8xf32> to vector<2x8x8xbf16>
    %40 = arith.truncf %24 : vector<2x8x8xf32> to vector<2x8x8xbf16>
    "tpu.trace_start"() <{level = 10 : i32, message = "bqk,bkd->bqd"}> : () -> ()
    %cst_17 = arith.constant dense<0.000000e+00> : vector<2x8x8xf32>
    %41 = tpu.matmul %39, %40, %cst_17 {dimension_numbers = #tpu.dot_dimension_numbers<[2], [1], [1], [2], [0, 0, 0, 1, 1, 2], [0], [0]>} : vector<2x8x8xbf16>, vector<2x8x8xbf16>, vector<2x8x8xf32> -> vector<2x8x8xf32>
    "tpu.trace_stop"() : () -> ()
    %42 = vector.shape_cast %41 : vector<2x8x8xf32> to vector<16x8xf32>
    %c0_18 = arith.constant 0 : index
    %c0_19 = arith.constant 0 : index
    %43 = vector.load %arg10[%c0_18, %c0_19] : memref<16x32xf32, #tpu.memory_space<vmem>>, vector<16x8xf32>
    tpu.vector_store %arg10[%c0_18, %c0_19], %42 {strides = array<i32>} : memref<16x32xf32, #tpu.memory_space<vmem>>, vector<16x8xf32>,
    %44 = vector.extract_strided_slice %18 {offsets = [0, 8], sizes = [16, 8], strides = [1, 1]} : vector<16x96xf32> to vector<16x8xf32>
    %45 = vector.shape_cast %44 : vector<16x8xf32> to vector<2x8x8xf32>
    %46 = vector.extract_strided_slice %18 {offsets = [0, 40], sizes = [16, 8], strides = [1, 1]} : vector<16x96xf32> to vector<16x8xf32>
    %47 = vector.shape_cast %46 : vector<16x8xf32> to vector<2x8x8xf32>
    %48 = vector.extract_strided_slice %18 {offsets = [0, 72], sizes = [16, 8], strides = [1, 1]} : vector<16x96xf32> to vector<16x8xf32>
    %49 = vector.shape_cast %48 : vector<16x8xf32> to vector<2x8x8xf32>
    "tpu.trace_start"() <{level = 10 : i32, message = "bqd,bkd->bqk"}> : () -> ()
    %cst_20 = arith.constant dense<0.000000e+00> : vector<2x8x8xf32>
    %50 = tpu.matmul %45, %47, %cst_20 {dimension_numbers = #tpu.dot_dimension_numbers<[2], [2], [1], [1], [0, 0, 0, 1, 1, 1], [0], [0]>} : vector<2x8x8xf32>, vector<2x8x8xf32>, vector<2x8x8xf32> -> vector<2x8x8xf32>
    "tpu.trace_stop"() : () -> ()
    %c1 = arith.constant 1 : index
    %c0_21 = arith.constant 0 : index
    %c0_22 = arith.constant 0 : index
    %c0_23 = arith.constant 0 : index
    %51 = vector.load %arg1[%c1, %c0_21, %c0_22, %c0_23] : memref<4x2x8x8xf32, #tpu.memory_space<vmem>>, vector<1x2x8x8xf32>
    %52 = vector.shape_cast %51 : vector<1x2x8x8xf32> to vector<2x8x8xf32>
    %53 = arith.addf %50, %52 : vector<2x8x8xf32>
    %cst_24 = arith.constant dense<0xFF800000> : vector<2x8xf32>
    %54 = vector.multi_reduction <maximumf>, %53, %cst_24 [2] : vector<2x8x8xf32> to vector<2x8xf32>
    %55 = vector.shape_cast %54 : vector<2x8xf32> to vector<2x8x1xf32>
    %56 = vector.broadcast %55 : vector<2x8x1xf32> to vector<2x8x8xf32>
    %57 = arith.subf %53, %56 : vector<2x8x8xf32>
    %58 = math.exp %57 : vector<2x8x8xf32>
    %cst_25 = arith.constant dense<0.000000e+00> : vector<2x8xf32>
    %59 = vector.multi_reduction <add>, %58, %cst_25 [2] : vector<2x8x8xf32> to vector<2x8xf32>
    %60 = vector.shape_cast %59 : vector<2x8xf32> to vector<2x8x1xf32>
    %61 = tpu.reciprocal %60 {approx = true} : vector<2x8x1xf32> -> vector<2x8x1xf32>
    %62 = vector.broadcast %61 : vector<2x8x1xf32> to vector<2x8x8xf32>
    %63 = arith.mulf %58, %62 : vector<2x8x8xf32>
    %64 = arith.truncf %63 : vector<2x8x8xf32> to vector<2x8x8xbf16>
    %65 = arith.truncf %49 : vector<2x8x8xf32> to vector<2x8x8xbf16>
    "tpu.trace_start"() <{level = 10 : i32, message = "bqk,bkd->bqd"}> : () -> ()
    %cst_26 = arith.constant dense<0.000000e+00> : vector<2x8x8xf32>
    %66 = tpu.matmul %64, %65, %cst_26 {dimension_numbers = #tpu.dot_dimension_numbers<[2], [1], [1], [2], [0, 0, 0, 1, 1, 2], [0], [0]>} : vector<2x8x8xbf16>, vector<2x8x8xbf16>, vector<2x8x8xf32> -> vector<2x8x8xf32>
    "tpu.trace_stop"() : () -> ()
    %67 = vector.shape_cast %66 : vector<2x8x8xf32> to vector<16x8xf32>
    %c0_27 = arith.constant 0 : index
    %c8 = arith.constant 8 : index
    %68 = vector.load %arg10[%c0_27, %c8] : memref<16x32xf32, #tpu.memory_space<vmem>>, vector<16x8xf32>
    tpu.vector_store %arg10[%c0_27, %c8], %67 {strides = array<i32>} : memref<16x32xf32, #tpu.memory_space<vmem>>, vector<16x8xf32>,
    %69 = vector.extract_strided_slice %18 {offsets = [0, 16], sizes = [16, 8], strides = [1, 1]} : vector<16x96xf32> to vector<16x8xf32>
    %70 = vector.shape_cast %69 : vector<16x8xf32> to vector<2x8x8xf32>
    %71 = vector.extract_strided_slice %18 {offsets = [0, 48], sizes = [16, 8], strides = [1, 1]} : vector<16x96xf32> to vector<16x8xf32>
    %72 = vector.shape_cast %71 : vector<16x8xf32> to vector<2x8x8xf32>
    %73 = vector.extract_strided_slice %18 {offsets = [0, 80], sizes = [16, 8], strides = [1, 1]} : vector<16x96xf32> to vector<16x8xf32>
    %74 = vector.shape_cast %73 : vector<16x8xf32> to vector<2x8x8xf32>
    "tpu.trace_start"() <{level = 10 : i32, message = "bqd,bkd->bqk"}> : () -> ()
    %cst_28 = arith.constant dense<0.000000e+00> : vector<2x8x8xf32>
    %75 = tpu.matmul %70, %72, %cst_28 {dimension_numbers = #tpu.dot_dimension_numbers<[2], [2], [1], [1], [0, 0, 0, 1, 1, 1], [0], [0]>} : vector<2x8x8xf32>, vector<2x8x8xf32>, vector<2x8x8xf32> -> vector<2x8x8xf32>
    "tpu.trace_stop"() : () -> ()
    %c2 = arith.constant 2 : index
    %c0_29 = arith.constant 0 : index
    %c0_30 = arith.constant 0 : index
    %c0_31 = arith.constant 0 : index
    %76 = vector.load %arg1[%c2, %c0_29, %c0_30, %c0_31] : memref<4x2x8x8xf32, #tpu.memory_space<vmem>>, vector<1x2x8x8xf32>
    %77 = vector.shape_cast %76 : vector<1x2x8x8xf32> to vector<2x8x8xf32>
    %78 = arith.addf %75, %77 : vector<2x8x8xf32>
    %cst_32 = arith.constant dense<0xFF800000> : vector<2x8xf32>
    %79 = vector.multi_reduction <maximumf>, %78, %cst_32 [2] : vector<2x8x8xf32> to vector<2x8xf32>
    %80 = vector.shape_cast %79 : vector<2x8xf32> to vector<2x8x1xf32>
    %81 = vector.broadcast %80 : vector<2x8x1xf32> to vector<2x8x8xf32>
    %82 = arith.subf %78, %81 : vector<2x8x8xf32>
    %83 = math.exp %82 : vector<2x8x8xf32>
    %cst_33 = arith.constant dense<0.000000e+00> : vector<2x8xf32>
    %84 = vector.multi_reduction <add>, %83, %cst_33 [2] : vector<2x8x8xf32> to vector<2x8xf32>
    %85 = vector.shape_cast %84 : vector<2x8xf32> to vector<2x8x1xf32>
    %86 = tpu.reciprocal %85 {approx = true} : vector<2x8x1xf32> -> vector<2x8x1xf32>
    %87 = vector.broadcast %86 : vector<2x8x1xf32> to vector<2x8x8xf32>
    %88 = arith.mulf %83, %87 : vector<2x8x8xf32>
    %89 = arith.truncf %88 : vector<2x8x8xf32> to vector<2x8x8xbf16>
    %90 = arith.truncf %74 : vector<2x8x8xf32> to vector<2x8x8xbf16>
    "tpu.trace_start"() <{level = 10 : i32, message = "bqk,bkd->bqd"}> : () -> ()
    %cst_34 = arith.constant dense<0.000000e+00> : vector<2x8x8xf32>
    %91 = tpu.matmul %89, %90, %cst_34 {dimension_numbers = #tpu.dot_dimension_numbers<[2], [1], [1], [2], [0, 0, 0, 1, 1, 2], [0], [0]>} : vector<2x8x8xbf16>, vector<2x8x8xbf16>, vector<2x8x8xf32> -> vector<2x8x8xf32>
    "tpu.trace_stop"() : () -> ()
    %92 = vector.shape_cast %91 : vector<2x8x8xf32> to vector<16x8xf32>
    %c0_35 = arith.constant 0 : index
    %c16 = arith.constant 16 : index
    %93 = vector.load %arg10[%c0_35, %c16] : memref<16x32xf32, #tpu.memory_space<vmem>>, vector<16x8xf32>
    tpu.vector_store %arg10[%c0_35, %c16], %92 {strides = array<i32>} : memref<16x32xf32, #tpu.memory_space<vmem>>, vector<16x8xf32>,
    %94 = vector.extract_strided_slice %18 {offsets = [0, 24], sizes = [16, 8], strides = [1, 1]} : vector<16x96xf32> to vector<16x8xf32>
    %95 = vector.shape_cast %94 : vector<16x8xf32> to vector<2x8x8xf32>
    %96 = vector.extract_strided_slice %18 {offsets = [0, 56], sizes = [16, 8], strides = [1, 1]} : vector<16x96xf32> to vector<16x8xf32>
    %97 = vector.shape_cast %96 : vector<16x8xf32> to vector<2x8x8xf32>
    %98 = vector.extract_strided_slice %18 {offsets = [0, 88], sizes = [16, 8], strides = [1, 1]} : vector<16x96xf32> to vector<16x8xf32>
    %99 = vector.shape_cast %98 : vector<16x8xf32> to vector<2x8x8xf32>
    "tpu.trace_start"() <{level = 10 : i32, message = "bqd,bkd->bqk"}> : () -> ()
    %cst_36 = arith.constant dense<0.000000e+00> : vector<2x8x8xf32>
    %100 = tpu.matmul %95, %97, %cst_36 {dimension_numbers = #tpu.dot_dimension_numbers<[2], [2], [1], [1], [0, 0, 0, 1, 1, 1], [0], [0]>} : vector<2x8x8xf32>, vector<2x8x8xf32>, vector<2x8x8xf32> -> vector<2x8x8xf32>
    "tpu.trace_stop"() : () -> ()
    %c3 = arith.constant 3 : index
    %c0_37 = arith.constant 0 : index
    %c0_38 = arith.constant 0 : index
    %c0_39 = arith.constant 0 : index
    %101 = vector.load %arg1[%c3, %c0_37, %c0_38, %c0_39] : memref<4x2x8x8xf32, #tpu.memory_space<vmem>>, vector<1x2x8x8xf32>
    %102 = vector.shape_cast %101 : vector<1x2x8x8xf32> to vector<2x8x8xf32>
    %103 = arith.addf %100, %102 : vector<2x8x8xf32>
    %cst_40 = arith.constant dense<0xFF800000> : vector<2x8xf32>
    %104 = vector.multi_reduction <maximumf>, %103, %cst_40 [2] : vector<2x8x8xf32> to vector<2x8xf32>
    %105 = vector.shape_cast %104 : vector<2x8xf32> to vector<2x8x1xf32>
    %106 = vector.broadcast %105 : vector<2x8x1xf32> to vector<2x8x8xf32>
    %107 = arith.subf %103, %106 : vector<2x8x8xf32>
    %108 = math.exp %107 : vector<2x8x8xf32>
    %cst_41 = arith.constant dense<0.000000e+00> : vector<2x8xf32>
    %109 = vector.multi_reduction <add>, %108, %cst_41 [2] : vector<2x8x8xf32> to vector<2x8xf32>
    %110 = vector.shape_cast %109 : vector<2x8xf32> to vector<2x8x1xf32>
    %111 = tpu.reciprocal %110 {approx = true} : vector<2x8x1xf32> -> vector<2x8x1xf32>
    %112 = vector.broadcast %111 : vector<2x8x1xf32> to vector<2x8x8xf32>
    %113 = arith.mulf %108, %112 : vector<2x8x8xf32>
    %114 = arith.truncf %113 : vector<2x8x8xf32> to vector<2x8x8xbf16>
    %115 = arith.truncf %99 : vector<2x8x8xf32> to vector<2x8x8xbf16>
    "tpu.trace_start"() <{level = 10 : i32, message = "bqk,bkd->bqd"}> : () -> ()
    %cst_42 = arith.constant dense<0.000000e+00> : vector<2x8x8xf32>
    %116 = tpu.matmul %114, %115, %cst_42 {dimension_numbers = #tpu.dot_dimension_numbers<[2], [1], [1], [2], [0, 0, 0, 1, 1, 2], [0], [0]>} : vector<2x8x8xbf16>, vector<2x8x8xbf16>, vector<2x8x8xf32> -> vector<2x8x8xf32>
    "tpu.trace_stop"() : () -> ()
    %117 = vector.shape_cast %116 : vector<2x8x8xf32> to vector<16x8xf32>
    %c0_43 = arith.constant 0 : index
    %c24 = arith.constant 24 : index
    %118 = vector.load %arg10[%c0_43, %c24] : memref<16x32xf32, #tpu.memory_space<vmem>>, vector<16x8xf32>
    tpu.vector_store %arg10[%c0_43, %c24], %117 {strides = array<i32>} : memref<16x32xf32, #tpu.memory_space<vmem>>, vector<16x8xf32>,
    %c0_44 = arith.constant 0 : index
    %c0_45 = arith.constant 0 : index
    %119 = vector.load %arg10[%c0_44, %c0_45] : memref<16x32xf32, #tpu.memory_space<vmem>>, vector<16x32xf32>
    %120 = arith.truncf %119 : vector<16x32xf32> to vector<16x32xbf16>
    %c0_46 = arith.constant 0 : index
    %c0_47 = arith.constant 0 : index
    %c0_48 = arith.constant 0 : index
    %121 = vector.load %arg5[%c0_46, %c0_47, %c0_48] : memref<2x32x32xbf16, #tpu.memory_space<vmem>>, vector<1x32x32xbf16>
    %122 = vector.shape_cast %121 : vector<1x32x32xbf16> to vector<32x32xbf16>
    %cst_49 = arith.constant dense<0.000000e+00> : vector<16x32xf32>
    %123 = tpu.matmul %120, %122, %cst_49 {dimension_numbers = #tpu.dot_dimension_numbers<[1], [0], [0], [1], [0, 0, 1, 1], [], []>} : vector<16x32xbf16>, vector<32x32xbf16>, vector<16x32xf32> -> vector<16x32xf32>
    %124 = arith.addf %0, %123 : vector<16x32xf32>
    %c0_50 = arith.constant 0 : index
    %c0_51 = arith.constant 0 : index
    %c0_52 = arith.constant 0 : index
    %125 = vector.load %arg3[%c0_50, %c0_51, %c0_52] : memref<2x1x32xf32, #tpu.memory_space<vmem>>, vector<1x1x32xf32>
    %126 = vector.shape_cast %125 : vector<1x1x32xf32> to vector<1x32xf32>
    %127 = arith.mulf %124, %124 : vector<16x32xf32>
    %cst_53 = arith.constant dense<0.000000e+00> : vector<16xf32>
    %128 = vector.multi_reduction <add>, %127, %cst_53 [1] : vector<16x32xf32> to vector<16xf32>
    %129 = vector.shape_cast %128 : vector<16xf32> to vector<16x1xf32>
    %cst_54 = arith.constant 3.200000e+01 : f32
    %130 = vector.broadcast %cst_54 : f32 to vector<16x1xf32>
    %131 = arith.divf %129, %130 : vector<16x1xf32>
    %cst_55 = arith.constant 9.99999997E-7 : f32
    %132 = vector.broadcast %cst_55 : f32 to vector<16x1xf32>
    %133 = arith.addf %131, %132 : vector<16x1xf32>
    %134 = math.rsqrt %133 : vector<16x1xf32>
    %135 = vector.broadcast %134 : vector<16x1xf32> to vector<16x32xf32>
    %136 = arith.mulf %124, %135 : vector<16x32xf32>
    %137 = vector.broadcast %126 : vector<1x32xf32> to vector<16x32xf32>
    %138 = arith.mulf %136, %137 : vector<16x32xf32>
    %139 = arith.truncf %138 : vector<16x32xf32> to vector<16x32xbf16>
    %c0_56 = arith.constant 0 : index
    %c0_57 = arith.constant 0 : index
    %c0_58 = arith.constant 0 : index
    %140 = vector.load %arg6[%c0_56, %c0_57, %c0_58] : memref<2x32x64xbf16, #tpu.memory_space<vmem>>, vector<1x32x64xbf16>
    %141 = vector.shape_cast %140 : vector<1x32x64xbf16> to vector<32x64xbf16>
    %cst_59 = arith.constant dense<0.000000e+00> : vector<16x64xf32>
    %142 = tpu.matmul %139, %141, %cst_59 {dimension_numbers = #tpu.dot_dimension_numbers<[1], [0], [0], [1], [0, 0, 1, 1], [], []>} : vector<16x32xbf16>, vector<32x64xbf16>, vector<16x64xf32> -> vector<16x64xf32>
    %cst_60 = arith.constant 0.000000e+00 : f32
    %143 = vector.broadcast %cst_60 : f32 to vector<16x64xf32>
    %144 = arith.maximumf %142, %143 : vector<16x64xf32>
    %145 = arith.truncf %144 : vector<16x64xf32> to vector<16x64xbf16>
    %c0_61 = arith.constant 0 : index
    %c0_62 = arith.constant 0 : index
    %c0_63 = arith.constant 0 : index
    %146 = vector.load %arg7[%c0_61, %c0_62, %c0_63] : memref<2x64x32xbf16, #tpu.memory_space<vmem>>, vector<1x64x32xbf16>
    %147 = vector.shape_cast %146 : vector<1x64x32xbf16> to vector<64x32xbf16>
    %cst_64 = arith.constant dense<0.000000e+00> : vector<16x32xf32>
    %148 = tpu.matmul %145, %147, %cst_64 {dimension_numbers = #tpu.dot_dimension_numbers<[1], [0], [0], [1], [0, 0, 1, 1], [], []>} : vector<16x64xbf16>, vector<64x32xbf16>, vector<16x32xf32> -> vector<16x32xf32>
    %149 = arith.addf %124, %148 : vector<16x32xf32>
    %c1_65 = arith.constant 1 : index
    %c0_66 = arith.constant 0 : index
    %c0_67 = arith.constant 0 : index
    %150 = vector.load %arg2[%c1_65, %c0_66, %c0_67] : memref<2x1x32xf32, #tpu.memory_space<vmem>>, vector<1x1x32xf32>
    %151 = vector.shape_cast %150 : vector<1x1x32xf32> to vector<1x32xf32>
    %152 = arith.mulf %149, %149 : vector<16x32xf32>
    %cst_68 = arith.constant dense<0.000000e+00> : vector<16xf32>
    %153 = vector.multi_reduction <add>, %152, %cst_68 [1] : vector<16x32xf32> to vector<16xf32>
    %154 = vector.shape_cast %153 : vector<16xf32> to vector<16x1xf32>
    %cst_69 = arith.constant 3.200000e+01 : f32
    %155 = vector.broadcast %cst_69 : f32 to vector<16x1xf32>
    %156 = arith.divf %154, %155 : vector<16x1xf32>
    %cst_70 = arith.constant 9.99999997E-7 : f32
    %157 = vector.broadcast %cst_70 : f32 to vector<16x1xf32>
    %158 = arith.addf %156, %157 : vector<16x1xf32>
    %159 = math.rsqrt %158 : vector<16x1xf32>
    %160 = vector.broadcast %159 : vector<16x1xf32> to vector<16x32xf32>
    %161 = arith.mulf %149, %160 : vector<16x32xf32>
    %162 = vector.broadcast %151 : vector<1x32xf32> to vector<16x32xf32>
    %163 = arith.mulf %161, %162 : vector<16x32xf32>
    %164 = arith.truncf %163 : vector<16x32xf32> to vector<16x32xbf16>
    %c1_71 = arith.constant 1 : index
    %c0_72 = arith.constant 0 : index
    %c0_73 = arith.constant 0 : index
    %165 = vector.load %arg4[%c1_71, %c0_72, %c0_73] : memref<2x32x96xbf16, #tpu.memory_space<vmem>>, vector<1x32x96xbf16>
    %166 = vector.shape_cast %165 : vector<1x32x96xbf16> to vector<32x96xbf16>
    %cst_74 = arith.constant dense<0.000000e+00> : vector<16x96xf32>
    %167 = tpu.matmul %164, %166, %cst_74 {dimension_numbers = #tpu.dot_dimension_numbers<[1], [0], [0], [1], [0, 0, 1, 1], [], []>} : vector<16x32xbf16>, vector<32x96xbf16>, vector<16x96xf32> -> vector<16x96xf32>
    %168 = vector.extract_strided_slice %167 {offsets = [0, 0], sizes = [16, 8], strides = [1, 1]} : vector<16x96xf32> to vector<16x8xf32>
    %169 = vector.shape_cast %168 : vector<16x8xf32> to vector<2x8x8xf32>
    %170 = vector.extract_strided_slice %167 {offsets = [0, 32], sizes = [16, 8], strides = [1, 1]} : vector<16x96xf32> to vector<16x8xf32>
    %171 = vector.shape_cast %170 : vector<16x8xf32> to vector<2x8x8xf32>
    %172 = vector.extract_strided_slice %167 {offsets = [0, 64], sizes = [16, 8], strides = [1, 1]} : vector<16x96xf32> to vector<16x8xf32>
    %173 = vector.shape_cast %172 : vector<16x8xf32> to vector<2x8x8xf32>
    "tpu.trace_start"() <{level = 10 : i32, message = "bqd,bkd->bqk"}> : () -> ()
    %cst_75 = arith.constant dense<0.000000e+00> : vector<2x8x8xf32>
    %174 = tpu.matmul %169, %171, %cst_75 {dimension_numbers = #tpu.dot_dimension_numbers<[2], [2], [1], [1], [0, 0, 0, 1, 1, 1], [0], [0]>} : vector<2x8x8xf32>, vector<2x8x8xf32>, vector<2x8x8xf32> -> vector<2x8x8xf32>
    "tpu.trace_stop"() : () -> ()
    %c0_76 = arith.constant 0 : index
    %c0_77 = arith.constant 0 : index
    %c0_78 = arith.constant 0 : index
    %c0_79 = arith.constant 0 : index
    %175 = vector.load %arg1[%c0_76, %c0_77, %c0_78, %c0_79] : memref<4x2x8x8xf32, #tpu.memory_space<vmem>>, vector<1x2x8x8xf32>
    %176 = vector.shape_cast %175 : vector<1x2x8x8xf32> to vector<2x8x8xf32>
    %177 = arith.addf %174, %176 : vector<2x8x8xf32>
    %cst_80 = arith.constant dense<0xFF800000> : vector<2x8xf32>
    %178 = vector.multi_reduction <maximumf>, %177, %cst_80 [2] : vector<2x8x8xf32> to vector<2x8xf32>
    %179 = vector.shape_cast %178 : vector<2x8xf32> to vector<2x8x1xf32>
    %180 = vector.broadcast %179 : vector<2x8x1xf32> to vector<2x8x8xf32>
    %181 = arith.subf %177, %180 : vector<2x8x8xf32>
    %182 = math.exp %181 : vector<2x8x8xf32>
    %cst_81 = arith.constant dense<0.000000e+00> : vector<2x8xf32>
    %183 = vector.multi_reduction <add>, %182, %cst_81 [2] : vector<2x8x8xf32> to vector<2x8xf32>
    %184 = vector.shape_cast %183 : vector<2x8xf32> to vector<2x8x1xf32>
    %185 = tpu.reciprocal %184 {approx = true} : vector<2x8x1xf32> -> vector<2x8x1xf32>
    %186 = vector.broadcast %185 : vector<2x8x1xf32> to vector<2x8x8xf32>
    %187 = arith.mulf %182, %186 : vector<2x8x8xf32>
    %188 = arith.truncf %187 : vector<2x8x8xf32> to vector<2x8x8xbf16>
    %189 = arith.truncf %173 : vector<2x8x8xf32> to vector<2x8x8xbf16>
    "tpu.trace_start"() <{level = 10 : i32, message = "bqk,bkd->bqd"}> : () -> ()
    %cst_82 = arith.constant dense<0.000000e+00> : vector<2x8x8xf32>
    %190 = tpu.matmul %188, %189, %cst_82 {dimension_numbers = #tpu.dot_dimension_numbers<[2], [1], [1], [2], [0, 0, 0, 1, 1, 2], [0], [0]>} : vector<2x8x8xbf16>, vector<2x8x8xbf16>, vector<2x8x8xf32> -> vector<2x8x8xf32>
    "tpu.trace_stop"() : () -> ()
    %191 = vector.shape_cast %190 : vector<2x8x8xf32> to vector<16x8xf32>
    %c0_83 = arith.constant 0 : index
    %c0_84 = arith.constant 0 : index
    %192 = vector.load %arg10[%c0_83, %c0_84] : memref<16x32xf32, #tpu.memory_space<vmem>>, vector<16x8xf32>
    tpu.vector_store %arg10[%c0_83, %c0_84], %191 {strides = array<i32>} : memref<16x32xf32, #tpu.memory_space<vmem>>, vector<16x8xf32>,
    %193 = vector.extract_strided_slice %167 {offsets = [0, 8], sizes = [16, 8], strides = [1, 1]} : vector<16x96xf32> to vector<16x8xf32>
    %194 = vector.shape_cast %193 : vector<16x8xf32> to vector<2x8x8xf32>
    %195 = vector.extract_strided_slice %167 {offsets = [0, 40], sizes = [16, 8], strides = [1, 1]} : vector<16x96xf32> to vector<16x8xf32>
    %196 = vector.shape_cast %195 : vector<16x8xf32> to vector<2x8x8xf32>
    %197 = vector.extract_strided_slice %167 {offsets = [0, 72], sizes = [16, 8], strides = [1, 1]} : vector<16x96xf32> to vector<16x8xf32>
    %198 = vector.shape_cast %197 : vector<16x8xf32> to vector<2x8x8xf32>
    "tpu.trace_start"() <{level = 10 : i32, message = "bqd,bkd->bqk"}> : () -> ()
    %cst_85 = arith.constant dense<0.000000e+00> : vector<2x8x8xf32>
    %199 = tpu.matmul %194, %196, %cst_85 {dimension_numbers = #tpu.dot_dimension_numbers<[2], [2], [1], [1], [0, 0, 0, 1, 1, 1], [0], [0]>} : vector<2x8x8xf32>, vector<2x8x8xf32>, vector<2x8x8xf32> -> vector<2x8x8xf32>
    "tpu.trace_stop"() : () -> ()
    %c1_86 = arith.constant 1 : index
    %c0_87 = arith.constant 0 : index
    %c0_88 = arith.constant 0 : index
    %c0_89 = arith.constant 0 : index
    %200 = vector.load %arg1[%c1_86, %c0_87, %c0_88, %c0_89] : memref<4x2x8x8xf32, #tpu.memory_space<vmem>>, vector<1x2x8x8xf32>
    %201 = vector.shape_cast %200 : vector<1x2x8x8xf32> to vector<2x8x8xf32>
    %202 = arith.addf %199, %201 : vector<2x8x8xf32>
    %cst_90 = arith.constant dense<0xFF800000> : vector<2x8xf32>
    %203 = vector.multi_reduction <maximumf>, %202, %cst_90 [2] : vector<2x8x8xf32> to vector<2x8xf32>
    %204 = vector.shape_cast %203 : vector<2x8xf32> to vector<2x8x1xf32>
    %205 = vector.broadcast %204 : vector<2x8x1xf32> to vector<2x8x8xf32>
    %206 = arith.subf %202, %205 : vector<2x8x8xf32>
    %207 = math.exp %206 : vector<2x8x8xf32>
    %cst_91 = arith.constant dense<0.000000e+00> : vector<2x8xf32>
    %208 = vector.multi_reduction <add>, %207, %cst_91 [2] : vector<2x8x8xf32> to vector<2x8xf32>
    %209 = vector.shape_cast %208 : vector<2x8xf32> to vector<2x8x1xf32>
    %210 = tpu.reciprocal %209 {approx = true} : vector<2x8x1xf32> -> vector<2x8x1xf32>
    %211 = vector.broadcast %210 : vector<2x8x1xf32> to vector<2x8x8xf32>
    %212 = arith.mulf %207, %211 : vector<2x8x8xf32>
    %213 = arith.truncf %212 : vector<2x8x8xf32> to vector<2x8x8xbf16>
    %214 = arith.truncf %198 : vector<2x8x8xf32> to vector<2x8x8xbf16>
    "tpu.trace_start"() <{level = 10 : i32, message = "bqk,bkd->bqd"}> : () -> ()
    %cst_92 = arith.constant dense<0.000000e+00> : vector<2x8x8xf32>
    %215 = tpu.matmul %213, %214, %cst_92 {dimension_numbers = #tpu.dot_dimension_numbers<[2], [1], [1], [2], [0, 0, 0, 1, 1, 2], [0], [0]>} : vector<2x8x8xbf16>, vector<2x8x8xbf16>, vector<2x8x8xf32> -> vector<2x8x8xf32>
    "tpu.trace_stop"() : () -> ()
    %216 = vector.shape_cast %215 : vector<2x8x8xf32> to vector<16x8xf32>
    %c0_93 = arith.constant 0 : index
    %c8_94 = arith.constant 8 : index
    %217 = vector.load %arg10[%c0_93, %c8_94] : memref<16x32xf32, #tpu.memory_space<vmem>>, vector<16x8xf32>
    tpu.vector_store %arg10[%c0_93, %c8_94], %216 {strides = array<i32>} : memref<16x32xf32, #tpu.memory_space<vmem>>, vector<16x8xf32>,
    %218 = vector.extract_strided_slice %167 {offsets = [0, 16], sizes = [16, 8], strides = [1, 1]} : vector<16x96xf32> to vector<16x8xf32>
    %219 = vector.shape_cast %218 : vector<16x8xf32> to vector<2x8x8xf32>
    %220 = vector.extract_strided_slice %167 {offsets = [0, 48], sizes = [16, 8], strides = [1, 1]} : vector<16x96xf32> to vector<16x8xf32>
    %221 = vector.shape_cast %220 : vector<16x8xf32> to vector<2x8x8xf32>
    %222 = vector.extract_strided_slice %167 {offsets = [0, 80], sizes = [16, 8], strides = [1, 1]} : vector<16x96xf32> to vector<16x8xf32>
    %223 = vector.shape_cast %222 : vector<16x8xf32> to vector<2x8x8xf32>
    "tpu.trace_start"() <{level = 10 : i32, message = "bqd,bkd->bqk"}> : () -> ()
    %cst_95 = arith.constant dense<0.000000e+00> : vector<2x8x8xf32>
    %224 = tpu.matmul %219, %221, %cst_95 {dimension_numbers = #tpu.dot_dimension_numbers<[2], [2], [1], [1], [0, 0, 0, 1, 1, 1], [0], [0]>} : vector<2x8x8xf32>, vector<2x8x8xf32>, vector<2x8x8xf32> -> vector<2x8x8xf32>
    "tpu.trace_stop"() : () -> ()
    %c2_96 = arith.constant 2 : index
    %c0_97 = arith.constant 0 : index
    %c0_98 = arith.constant 0 : index
    %c0_99 = arith.constant 0 : index
    %225 = vector.load %arg1[%c2_96, %c0_97, %c0_98, %c0_99] : memref<4x2x8x8xf32, #tpu.memory_space<vmem>>, vector<1x2x8x8xf32>
    %226 = vector.shape_cast %225 : vector<1x2x8x8xf32> to vector<2x8x8xf32>
    %227 = arith.addf %224, %226 : vector<2x8x8xf32>
    %cst_100 = arith.constant dense<0xFF800000> : vector<2x8xf32>
    %228 = vector.multi_reduction <maximumf>, %227, %cst_100 [2] : vector<2x8x8xf32> to vector<2x8xf32>
    %229 = vector.shape_cast %228 : vector<2x8xf32> to vector<2x8x1xf32>
    %230 = vector.broadcast %229 : vector<2x8x1xf32> to vector<2x8x8xf32>
    %231 = arith.subf %227, %230 : vector<2x8x8xf32>
    %232 = math.exp %231 : vector<2x8x8xf32>
    %cst_101 = arith.constant dense<0.000000e+00> : vector<2x8xf32>
    %233 = vector.multi_reduction <add>, %232, %cst_101 [2] : vector<2x8x8xf32> to vector<2x8xf32>
    %234 = vector.shape_cast %233 : vector<2x8xf32> to vector<2x8x1xf32>
    %235 = tpu.reciprocal %234 {approx = true} : vector<2x8x1xf32> -> vector<2x8x1xf32>
    %236 = vector.broadcast %235 : vector<2x8x1xf32> to vector<2x8x8xf32>
    %237 = arith.mulf %232, %236 : vector<2x8x8xf32>
    %238 = arith.truncf %237 : vector<2x8x8xf32> to vector<2x8x8xbf16>
    %239 = arith.truncf %223 : vector<2x8x8xf32> to vector<2x8x8xbf16>
    "tpu.trace_start"() <{level = 10 : i32, message = "bqk,bkd->bqd"}> : () -> ()
    %cst_102 = arith.constant dense<0.000000e+00> : vector<2x8x8xf32>
    %240 = tpu.matmul %238, %239, %cst_102 {dimension_numbers = #tpu.dot_dimension_numbers<[2], [1], [1], [2], [0, 0, 0, 1, 1, 2], [0], [0]>} : vector<2x8x8xbf16>, vector<2x8x8xbf16>, vector<2x8x8xf32> -> vector<2x8x8xf32>
    "tpu.trace_stop"() : () -> ()
    %241 = vector.shape_cast %240 : vector<2x8x8xf32> to vector<16x8xf32>
    %c0_103 = arith.constant 0 : index
    %c16_104 = arith.constant 16 : index
    %242 = vector.load %arg10[%c0_103, %c16_104] : memref<16x32xf32, #tpu.memory_space<vmem>>, vector<16x8xf32>
    tpu.vector_store %arg10[%c0_103, %c16_104], %241 {strides = array<i32>} : memref<16x32xf32, #tpu.memory_space<vmem>>, vector<16x8xf32>,
    %243 = vector.extract_strided_slice %167 {offsets = [0, 24], sizes = [16, 8], strides = [1, 1]} : vector<16x96xf32> to vector<16x8xf32>
    %244 = vector.shape_cast %243 : vector<16x8xf32> to vector<2x8x8xf32>
    %245 = vector.extract_strided_slice %167 {offsets = [0, 56], sizes = [16, 8], strides = [1, 1]} : vector<16x96xf32> to vector<16x8xf32>
    %246 = vector.shape_cast %245 : vector<16x8xf32> to vector<2x8x8xf32>
    %247 = vector.extract_strided_slice %167 {offsets = [0, 88], sizes = [16, 8], strides = [1, 1]} : vector<16x96xf32> to vector<16x8xf32>
    %248 = vector.shape_cast %247 : vector<16x8xf32> to vector<2x8x8xf32>
    "tpu.trace_start"() <{level = 10 : i32, message = "bqd,bkd->bqk"}> : () -> ()
    %cst_105 = arith.constant dense<0.000000e+00> : vector<2x8x8xf32>
    %249 = tpu.matmul %244, %246, %cst_105 {dimension_numbers = #tpu.dot_dimension_numbers<[2], [2], [1], [1], [0, 0, 0, 1, 1, 1], [0], [0]>} : vector<2x8x8xf32>, vector<2x8x8xf32>, vector<2x8x8xf32> -> vector<2x8x8xf32>
    "tpu.trace_stop"() : () -> ()
    %c3_106 = arith.constant 3 : index
    %c0_107 = arith.constant 0 : index
    %c0_108 = arith.constant 0 : index
    %c0_109 = arith.constant 0 : index
    %250 = vector.load %arg1[%c3_106, %c0_107, %c0_108, %c0_109] : memref<4x2x8x8xf32, #tpu.memory_space<vmem>>, vector<1x2x8x8xf32>
    %251 = vector.shape_cast %250 : vector<1x2x8x8xf32> to vector<2x8x8xf32>
    %252 = arith.addf %249, %251 : vector<2x8x8xf32>
    %cst_110 = arith.constant dense<0xFF800000> : vector<2x8xf32>
    %253 = vector.multi_reduction <maximumf>, %252, %cst_110 [2] : vector<2x8x8xf32> to vector<2x8xf32>
    %254 = vector.shape_cast %253 : vector<2x8xf32> to vector<2x8x1xf32>
    %255 = vector.broadcast %254 : vector<2x8x1xf32> to vector<2x8x8xf32>
    %256 = arith.subf %252, %255 : vector<2x8x8xf32>
    %257 = math.exp %256 : vector<2x8x8xf32>
    %cst_111 = arith.constant dense<0.000000e+00> : vector<2x8xf32>
    %258 = vector.multi_reduction <add>, %257, %cst_111 [2] : vector<2x8x8xf32> to vector<2x8xf32>
    %259 = vector.shape_cast %258 : vector<2x8xf32> to vector<2x8x1xf32>
    %260 = tpu.reciprocal %259 {approx = true} : vector<2x8x1xf32> -> vector<2x8x1xf32>
    %261 = vector.broadcast %260 : vector<2x8x1xf32> to vector<2x8x8xf32>
    %262 = arith.mulf %257, %261 : vector<2x8x8xf32>
    %263 = arith.truncf %262 : vector<2x8x8xf32> to vector<2x8x8xbf16>
    %264 = arith.truncf %248 : vector<2x8x8xf32> to vector<2x8x8xbf16>
    "tpu.trace_start"() <{level = 10 : i32, message = "bqk,bkd->bqd"}> : () -> ()
    %cst_112 = arith.constant dense<0.000000e+00> : vector<2x8x8xf32>
    %265 = tpu.matmul %263, %264, %cst_112 {dimension_numbers = #tpu.dot_dimension_numbers<[2], [1], [1], [2], [0, 0, 0, 1, 1, 2], [0], [0]>} : vector<2x8x8xbf16>, vector<2x8x8xbf16>, vector<2x8x8xf32> -> vector<2x8x8xf32>
    "tpu.trace_stop"() : () -> ()
    %266 = vector.shape_cast %265 : vector<2x8x8xf32> to vector<16x8xf32>
    %c0_113 = arith.constant 0 : index
    %c24_114 = arith.constant 24 : index
    %267 = vector.load %arg10[%c0_113, %c24_114] : memref<16x32xf32, #tpu.memory_space<vmem>>, vector<16x8xf32>
    tpu.vector_store %arg10[%c0_113, %c24_114], %266 {strides = array<i32>} : memref<16x32xf32, #tpu.memory_space<vmem>>, vector<16x8xf32>,
    %c0_115 = arith.constant 0 : index
    %c0_116 = arith.constant 0 : index
    %268 = vector.load %arg10[%c0_115, %c0_116] : memref<16x32xf32, #tpu.memory_space<vmem>>, vector<16x32xf32>
    %269 = arith.truncf %268 : vector<16x32xf32> to vector<16x32xbf16>
    %c1_117 = arith.constant 1 : index
    %c0_118 = arith.constant 0 : index
    %c0_119 = arith.constant 0 : index
    %270 = vector.load %arg5[%c1_117, %c0_118, %c0_119] : memref<2x32x32xbf16, #tpu.memory_space<vmem>>, vector<1x32x32xbf16>
    %271 = vector.shape_cast %270 : vector<1x32x32xbf16> to vector<32x32xbf16>
    %cst_120 = arith.constant dense<0.000000e+00> : vector<16x32xf32>
    %272 = tpu.matmul %269, %271, %cst_120 {dimension_numbers = #tpu.dot_dimension_numbers<[1], [0], [0], [1], [0, 0, 1, 1], [], []>} : vector<16x32xbf16>, vector<32x32xbf16>, vector<16x32xf32> -> vector<16x32xf32>
    %273 = arith.addf %149, %272 : vector<16x32xf32>
    %c1_121 = arith.constant 1 : index
    %c0_122 = arith.constant 0 : index
    %c0_123 = arith.constant 0 : index
    %274 = vector.load %arg3[%c1_121, %c0_122, %c0_123] : memref<2x1x32xf32, #tpu.memory_space<vmem>>, vector<1x1x32xf32>
    %275 = vector.shape_cast %274 : vector<1x1x32xf32> to vector<1x32xf32>
    %276 = arith.mulf %273, %273 : vector<16x32xf32>
    %cst_124 = arith.constant dense<0.000000e+00> : vector<16xf32>
    %277 = vector.multi_reduction <add>, %276, %cst_124 [1] : vector<16x32xf32> to vector<16xf32>
    %278 = vector.shape_cast %277 : vector<16xf32> to vector<16x1xf32>
    %cst_125 = arith.constant 3.200000e+01 : f32
    %279 = vector.broadcast %cst_125 : f32 to vector<16x1xf32>
    %280 = arith.divf %278, %279 : vector<16x1xf32>
    %cst_126 = arith.constant 9.99999997E-7 : f32
    %281 = vector.broadcast %cst_126 : f32 to vector<16x1xf32>
    %282 = arith.addf %280, %281 : vector<16x1xf32>
    %283 = math.rsqrt %282 : vector<16x1xf32>
    %284 = vector.broadcast %283 : vector<16x1xf32> to vector<16x32xf32>
    %285 = arith.mulf %273, %284 : vector<16x32xf32>
    %286 = vector.broadcast %275 : vector<1x32xf32> to vector<16x32xf32>
    %287 = arith.mulf %285, %286 : vector<16x32xf32>
    %288 = arith.truncf %287 : vector<16x32xf32> to vector<16x32xbf16>
    %c1_127 = arith.constant 1 : index
    %c0_128 = arith.constant 0 : index
    %c0_129 = arith.constant 0 : index
    %289 = vector.load %arg6[%c1_127, %c0_128, %c0_129] : memref<2x32x64xbf16, #tpu.memory_space<vmem>>, vector<1x32x64xbf16>
    %290 = vector.shape_cast %289 : vector<1x32x64xbf16> to vector<32x64xbf16>
    %cst_130 = arith.constant dense<0.000000e+00> : vector<16x64xf32>
    %291 = tpu.matmul %288, %290, %cst_130 {dimension_numbers = #tpu.dot_dimension_numbers<[1], [0], [0], [1], [0, 0, 1, 1], [], []>} : vector<16x32xbf16>, vector<32x64xbf16>, vector<16x64xf32> -> vector<16x64xf32>
    %cst_131 = arith.constant 0.000000e+00 : f32
    %292 = vector.broadcast %cst_131 : f32 to vector<16x64xf32>
    %293 = arith.maximumf %291, %292 : vector<16x64xf32>
    %294 = arith.truncf %293 : vector<16x64xf32> to vector<16x64xbf16>
    %c1_132 = arith.constant 1 : index
    %c0_133 = arith.constant 0 : index
    %c0_134 = arith.constant 0 : index
    %295 = vector.load %arg7[%c1_132, %c0_133, %c0_134] : memref<2x64x32xbf16, #tpu.memory_space<vmem>>, vector<1x64x32xbf16>
    %296 = vector.shape_cast %295 : vector<1x64x32xbf16> to vector<64x32xbf16>
    %cst_135 = arith.constant dense<0.000000e+00> : vector<16x32xf32>
    %297 = tpu.matmul %294, %296, %cst_135 {dimension_numbers = #tpu.dot_dimension_numbers<[1], [0], [0], [1], [0, 0, 1, 1], [], []>} : vector<16x64xbf16>, vector<64x32xbf16>, vector<16x32xf32> -> vector<16x32xf32>
    %298 = arith.addf %273, %297 : vector<16x32xf32>
    %c0_136 = arith.constant 0 : index
    %c0_137 = arith.constant 0 : index
    %299 = vector.load %arg8[%c0_136, %c0_137] : memref<1x32xf32, #tpu.memory_space<vmem>>, vector<1x32xf32>
    %300 = arith.mulf %298, %298 : vector<16x32xf32>
    %cst_138 = arith.constant dense<0.000000e+00> : vector<16xf32>
    %301 = vector.multi_reduction <add>, %300, %cst_138 [1] : vector<16x32xf32> to vector<16xf32>
    %302 = vector.shape_cast %301 : vector<16xf32> to vector<16x1xf32>
    %cst_139 = arith.constant 3.200000e+01 : f32
    %303 = vector.broadcast %cst_139 : f32 to vector<16x1xf32>
    %304 = arith.divf %302, %303 : vector<16x1xf32>
    %cst_140 = arith.constant 9.99999997E-7 : f32
    %305 = vector.broadcast %cst_140 : f32 to vector<16x1xf32>
    %306 = arith.addf %304, %305 : vector<16x1xf32>
    %307 = math.rsqrt %306 : vector<16x1xf32>
    %308 = vector.broadcast %307 : vector<16x1xf32> to vector<16x32xf32>
    %309 = arith.mulf %298, %308 : vector<16x32xf32>
    %310 = vector.broadcast %299 : vector<1x32xf32> to vector<16x32xf32>
    %311 = arith.mulf %309, %310 : vector<16x32xf32>
    %c0_141 = arith.constant 0 : index
    %c0_142 = arith.constant 0 : index
    %312 = vector.load %arg9[%c0_141, %c0_142] : memref<16x32xf32, #tpu.memory_space<vmem>>, vector<16x32xf32>
    tpu.vector_store %arg9[%c0_141, %c0_142], %311 {strides = array<i32>} : memref<16x32xf32, #tpu.memory_space<vmem>>, vector<16x32xf32>,
    return
  }
}

</mosaic_0001>

<bundles_post_ra>
// kernel: t5_encoder_forward.1
= control target key start
LH: loop header
LB: loop body
LE: loop exit
PB: predicated region body
PF: predicated region fallthrough
CT: control target
= control target key end

     0   :  { %vm39_vm0 = vcmask 261120   ;;  %s2530_s0 = inlined_call_operand.vmem [shape: f32[16,32], index: 0, kind: input, shape index: {}]   ;;  %s2531_s1 = inlined_call_operand.vmem [shape: f32[4,2,8,8], index: 1, kind: input, shape index: {}]   ;;  %s2532_s2 = inlined_call_operand.vmem [shape: f32[2,1,32], index: 2, kind: input, shape index: {}]   ;;  %s2533_s3 = inlined_call_operand.vmem [shape: f32[2,1,32], index: 3, kind: input, shape index: {}]   ;;  %s2534_s4 = inlined_call_operand.vmem [shape: bf16[2,32,96], index: 4, kind: input, shape index: {}]   ;;  %s2535_s5 = inlined_call_operand.vmem [shape: bf16[2,32,32], index: 5, kind: input, shape index: {}]   ;;  %s2536_s6 = inlined_call_operand.vmem [shape: bf16[2,32,64], index: 6, kind: input, shape index: {}]   ;;  %s2537_s7 = inlined_call_operand.vmem [shape: bf16[2,64,32], index: 7, kind: input, shape index: {}]   ;;  %s2538_s8 = inlined_call_operand.vmem [shape: f32[1,32], index: 8, kind: input, shape index: {}]   ;;  %s2539_s9 = inlined_call_operand.hbm [shape: f32[16,32], index: 9, kind: output, shape index: {}]  }
   0x1   :  { %v2061_v0 = vld [vmem:[%s2530_s0] sm:$0xff]  ;;  %v2068_v2 = vld [vmem:[%s2530_s0 + $0x8] sm:$0xff] }
   0x2   :  { %v37_v1 = vmul.f32 %v2061_v0, %v2061_v0 }
   0x3   :  { %14 = vsyncpa [#allocation4], 0  ;;  %v38_v4 = vmul.f32 %v2068_v2, %v2068_v2  ;;  %v1991_v6 = vmov 32.0   ;;  %v1838_v12 = vld [vmem:[%s2534_s4 + $0x8] sm:$0xff]  ;;  %v1837_v14 = vld [vmem:[%s2534_s4] sm:$0xff]  ;;  %s1992_s18 = smov 120  }
   0x4   :  { %v40_v3 = vsel %vm39_vm0, %v37_v1, 0.0  ;;  %1879 = vrcp.f32 %v1991_v6  ;;  %110 = vmatpush.bf16.msra.mxu0 %v1838_v12  ;;  %v1874_v35 = vld [vmem:[%s2532_s2] ss:$0 sm:$0xff]  ;;  %s1993_s19 = smov 88   ;;  %s1994_s20 = smov 96   ;;  %vm123_vm8 = vcmask 64512  }
   0x5   :  { %41 = vadd.xlane.f32.xlu0 %v40_v3  ;;  %v43_v5 = vsel %vm39_vm0, %v38_v4, 0.0  ;;  %s1995_s21 = smov 112   ;;  %v2121_v49 = vld [vmem:[%s2531_s1 + $0x8] sm:$0xff]  ;;  %v2128_v54 = vld [vmem:[%s2531_s1 + $0x18] sm:$0xff]  ;;  %s1996_s26 = smov 64   ;;  %v2153_v61 = vld [vmem:[%s2531_s1] sm:$0xff] }
   0x6   :  { %s1997_s27 = smov 72   ;;  %s1998_s28 = smov 80   ;;  %vm209_vm9 = vcmask 1043456   ;;  %vm385_vm10 = vcmask 130112   ;;  %vm521_vm11 = vcmask 195712   ;;  %vm657_vm12 = vcmask 261312  }
   0x7   :  { %s1999_s29 = smov 56   ;;  %s2000_s30 = smov 104  }
   0x8   :  { %111 = vmatpush.bf16.msra.mxu0 %v1837_v14  ;;  %s2001_s25 = smov 48   ;;  %s2002_s10 = smov 40  }
   0x9   :  { %s2004_s11 = smov 16   ;;  %s2005_s12 = smov 24  }
   0xa   :  { %v1880_v7 = vpop.eup %1879  ;;  %s2006_s23 = smov [#allocation3]   ;;  %s2007_s14 = smov 128  }
   0xb   :  { %v47_v8 = vmul.f32 32.0, %v1880_v7  ;;  %vm51_vm1 = vweird.f32 %v1880_v7  ;;  %s1653_s24 = sshll.u32 %s2006_s23, 4  ;;  %s1654_s24 = int_to_ptr.vmem [resolvable:$true] %s1653_s24 }
   0xd   :  { %44 = vadd.xlane.f32.xlu0 %v43_v5  ;;  %v48_v9 = vsub.f32 1.0, %v47_v8 }
   0xf   :  { %v49_v10 = vmul.f32 %v1880_v7, %v48_v9 }
  0x11   :  { %v50_v11 = vadd.f32 %v1880_v7, %v49_v10 }
  0x13   :  { %v2077_v13 = vsel %vm51_vm1, %v1880_v7, %v50_v11 }
  0x78   :  { %v42_v15 = vpop.xlane.xlu0 %41 }
  0x79   :  { %v53_v16 = vmul.f32 %v2077_v13, %v42_v15 }
  0x7b   :  { %v55_v17 = vadd.f32 1e-06, %v53_v16 }
  0x7d   :  { %1881 = vrsqrt.f32 %v55_v17  ;;  %vm63_vm3 = vweird.f32 %v55_v17 }
  0x80   :  { %v45_v18 = vpop.xlane.xlu0 %44 }
  0x81   :  { %v54_v19 = vmul.f32 %v2077_v13, %v45_v18 }
  0x83   :  { %v1882_v20 = vpop.eup %1881  ;;  %v56_v21 = vadd.f32 1e-06, %v54_v19 }
  0x84   :  { %v58_v22 = vmul.f32 %v1882_v20, %v55_v17  ;;  %vm64_vm2 = vweird.f32 %v1882_v20 }
  0x85   :  { %1883 = vrsqrt.f32 %v56_v21  ;;  %vm65_vm4 = vmor %vm63_vm3, %vm64_vm2  ;;  %vm73_vm6 = vweird.f32 %v56_v21 }
  0x86   :  { %v59_v23 = vmul.f32 %v1882_v20, %v58_v22  ;;  %v2172_v22 = vld [vmem:[%s2531_s1 + $0x10] sm:$0xff] }
  0x88   :  { %v60_v24 = vmul.f32 0.5, %v59_v23 }
  0x8a   :  { %v61_v25 = vsub.f32 1.5, %v60_v24 }
  0x8b   :  { %v1884_v26 = vpop.eup %1883 }
  0x8c   :  { %v68_v27 = vmul.f32 %v1884_v26, %v56_v21  ;;  %v62_v28 = vmul.f32 %v1882_v20, %v61_v25  ;;  %vm74_vm5 = vweird.f32 %v1884_v26 }
  0x8d   :  { %vm75_vm7 = vmor %vm73_vm6, %vm74_vm5 }
  0x8e   :  { %v69_v29 = vmul.f32 %v1884_v26, %v68_v27  ;;  %v66_v31 = vsel %vm65_vm4, %v1882_v20, %v62_v28  ;;  %vm807_vm4 = vcmask 523264  }
  0x8f   :  { %v77_v34 = vmul.f32 %v66_v31, %v2061_v0 }
  0x90   :  { %v70_v30 = vmul.f32 0.5, %v69_v29 }
  0x91   :  { %v82_v38 = vmul.f32 %v1874_v35, %v77_v34 }
  0x92   :  { %v71_v32 = vsub.f32 1.5, %v70_v30 }
  0x94   :  { %v72_v33 = vmul.f32 %v1884_v26, %v71_v32 }
  0x96   :  { %v76_v36 = vsel %vm75_vm7, %v1884_v26, %v72_v33 }
  0x97   :  { %v78_v37 = vmul.f32 %v76_v36, %v2068_v2 }
  0x99   :  { %v83_v39 = vmul.f32 %v1874_v35, %v78_v37 }
  0x9b   :  { %v84_v40 = vpack.c.bf16 %v83_v39, %v82_v38 }
  0x9d   :  { %1675 = vmatmul.msk.bf16.vlgmr.msra.gmra.mxu0 %vm39_vm0, %v84_v40 }
 0x11a   :  { %v2090_v41 = vpop.f32.mrf.mxu0 }
 0x11b   :  { %255 = vrot.lane.b32.xlu2 %v2090_v41, %s1992_s18 }
 0x122   :  { %v2094_v42 = vpop.f32.mrf.mxu0 }
 0x123   :  { %283 = vrot.lane.b32.xlu0 %v2094_v42, %s1992_s18  ;;  %285 = vrot.lane.b32.xlu2 %v2094_v42, %s1993_s19  ;;  %v200_v57 = vpack.c.bf16 %v2094_v42, %v2094_v42 }
 0x124   :  { %149 = vrot.lane.b32.xlu1 %v2094_v42, %s1994_s20 }
 0x125   :  { %v227_v59 = vunpack.c.l.b16 %v200_v57 }
 0x127   :  { %v2134_v60 = vpack.c.b16 %v227_v59, %v227_v59 }
 0x12b   :  { %121 = vrot.lane.b32.xlu0 %v2090_v41, %s1994_s20 }
 0x12c   :  { %257 = vrot.lane.b32.xlu1 %v2090_v41, %s1993_s19 }
 0x133   :  { %419 = vrot.lane.b32.xlu0 %v2094_v42, %s1995_s21 }
 0x175   :  { %v256_v43 = vpop.permute.xlu2 %255 }
 0x17d   :  { %v286_v48 = vpop.permute.xlu2 %285 }
 0x195   :  { %v284_v44 = vpop.permute.xlu0 %283 }
 0x196   :  { %v150_v45 = vpop.permute.xlu1 %149 }
 0x197   :  { %1678 = vmatpush.xpose.msk.msra.mxu2 %vm123_vm8, %v150_v45 }
 0x19a   :  { %1679 = vmatmul.msk.f32.vlgmr.msra.gmra.mxu2 %vm123_vm8, %v2094_v42 }
 0x19d   :  { %v122_v46 = vpop.permute.xlu0 %121 }
 0x19e   :  { %v258_v47 = vpop.permute.xlu1 %257  ;;  %1676 = vmatpush.xpose.msk.msra.mxu1 %vm123_vm8, %v122_v46 }
 0x19f   :  { %1684 = vmatpush.xpose.msk.msrb.mxu2 %vm123_vm8, %v258_v47 }
 0x1a1   :  { %1677 = vmatmul.msk.f32.vlgmr.msra.gmra.mxu1 %vm123_vm8, %v2090_v41 }
 0x1a2   :  { %1685 = vmatmul.msk.f32.vlgmr.msrb.gmra.mxu2 %vm123_vm8, %v256_v43  ;;  %v2189_v43 = vld [vmem:[%s2531_s1 + $0x28] sm:$0xff] }
 0x1a3   :  { %1686 = vmatpush.xpose.msk.msra.mxu2 %vm123_vm8, %v286_v48 }
 0x1a5   :  { %v420_v21 = vpop.permute.xlu0 %419 }
 0x1aa   :  { %1687 = vmatmul.msk.f32.vlgmr.msra.gmra.mxu2 %vm123_vm8, %v284_v44 }
 0x21d   :  { %v172_v50 = vpop.f32.mrf.mxu2 }
 0x21e   :  { %v173_v51 = vadd.f32 %v172_v50, %v2121_v49  ;;  %v145_v62 = vpop.f32.mrf.mxu1 }
 0x21f   :  { %v146_v63 = vadd.f32 %v145_v62, %v2153_v61 }
 0x220   :  { %v178_v52 = vsel %vm123_vm8, %v173_v51, -inf }
 0x221   :  { %179 = vmax.xlane.f32.xlu2 %v178_v52  ;;  %v175_v1 = vsel %vm123_vm8, %v146_v63, -inf }
 0x225   :  { %v280_v53 = vpop.f32.mrf.mxu2 }
 0x226   :  { %v281_v23 = vadd.f32 %v2172_v22, %v280_v53 }
 0x228   :  { %v311_v24 = vsel %vm123_vm8, %v281_v23, -inf }
 0x22d   :  { %v308_v55 = vpop.f32.mrf.mxu2 }
 0x22e   :  { %v309_v56 = vadd.f32 %v2128_v54, %v308_v55 }
 0x230   :  { %v314_v58 = vsel %vm123_vm8, %v309_v56, -inf }
 0x231   :  { %315 = vmax.xlane.f32.xlu1 %v314_v58 }
 0x239   :  { %229 = vrot.lane.b32.xlu2 %v2134_v60, %s1996_s26 }
 0x241   :  { %529 = vrot.lane.b32.xlu2 %v2090_v41, %s1997_s27 }
 0x249   :  { %393 = vrot.lane.b32.xlu2 %v2090_v41, %s1998_s28 }
 0x24a   :  { %356 = vrot.lane.b32.xlu1 %v2134_v60, %s1999_s29 }
 0x252   :  { %421 = vrot.lane.b32.xlu1 %v2094_v42, %s1998_s28 }
 0x25a   :  { %527 = vrot.lane.b32.xlu1 %v2090_v41, %s2000_s30 }
 0x262   :  { %557 = vrot.lane.b32.xlu1 %v2094_v42, %s1997_s27 }
 0x28c   :  { %176 = vmax.xlane.f32.xlu1 %v175_v1  ;;  %v2210_v1 = vld [vmem:[%s2531_s1 + $0x30] sm:$0xff] }
 0x294   :  { %v180_v3 = vpop.xlane.xlu2 %179 }
 0x295   :  { %v182_v4 = vsub.f32 %v173_v51, %v180_v3 }
 0x297   :  { %v185_v5 = vmul.f32 1.442695, %v182_v4 }
 0x299   :  { %1885 = vpow2.f32 %v185_v5  ;;  %v199_v5 = vpack.c.bf16 %v2090_v41, %v2090_v41 }
 0x29c   :  { %v230_v6 = vpop.permute.xlu2 %229 }
 0x29d   :  { %v235_v7 = vsel %vm209_vm9, %v230_v6, 0 }
 0x29e   :  { %244 = vmatpush.bf16.msrb.mxu1 %v235_v7 }
 0x29f   :  { %v1886_v8 = vpop.eup %1885 }
 0x2a0   :  { %v190_v9 = vsel %vm123_vm8, %v1886_v8, 0.0 }
 0x2a1   :  { %191 = vadd.xlane.f32.xlu2 %v190_v9  ;;  %v202_v9 = vunpack.c.l.b16 %v199_v5 }
 0x2a4   :  { %v316_v10 = vpop.xlane.xlu1 %315  ;;  %v530_v11 = vpop.permute.xlu2 %529 }
 0x2a5   :  { %v318_v12 = vsub.f32 %v309_v56, %v316_v10  ;;  %v2201_v56 = vld [vmem:[%s2531_s1 + $0x20] sm:$0xff] }
 0x2a7   :  { %v321_v14 = vmul.f32 1.442695, %v318_v12 }
 0x2a9   :  { %1887 = vpow2.f32 %v321_v14 }
 0x2ac   :  { %v394_v15 = vpop.permute.xlu2 %393 }
 0x2ad   :  { %1692 = vmatpush.xpose.msk.msra.mxu1 %vm123_vm8, %v394_v15 }
 0x2af   :  { %v1888_v16 = vpop.eup %1887 }
 0x2b0   :  { %v326_v17 = vsel %vm123_vm8, %v1888_v16, 0.0 }
 0x2b1   :  { %327 = vadd.xlane.f32.xlu0 %v326_v17 }
 0x2b9   :  { %391 = vrot.lane.b32.xlu2 %v2090_v41, %s1995_s21  ;;  %v2224_v41 = vld [vmem:[%s2531_s1 + $0x38] sm:$0xff]  ;;  %s2003_s1 = smov 8  }
 0x2bc   :  { %v357_v18 = vpop.permute.xlu1 %356 }
 0x2bd   :  { %v362_v19 = vsel %vm209_vm9, %v357_v18, 0 }
 0x2be   :  { %371 = vmatpush.bf16.msrb.mxu0 %v362_v19 }
 0x2c2   :  { %1700 = vmatpush.xpose.msk.msra.mxu0 %vm123_vm8, %v530_v11  ;;  %v2216_v11 = vpack.c.b16 %v202_v9, %v202_v9 }
 0x2c4   :  { %v422_v20 = vpop.permute.xlu1 %421 }
 0x2c5   :  { %555 = vrot.lane.b32.xlu0 %v2094_v42, %s2000_s30  ;;  %1694 = vmatpush.xpose.msk.msrb.mxu2 %vm123_vm8, %v422_v20 }
 0x2c8   :  { %1695 = vmatmul.msk.f32.vlgmr.msrb.gmra.mxu2 %vm123_vm8, %v420_v21 }
 0x2cc   :  { %v528_v25 = vpop.permute.xlu1 %527 }
 0x2d4   :  { %v558_v26 = vpop.permute.xlu1 %557 }
 0x2e2   :  { %312 = vmax.xlane.f32.xlu2 %v311_v24 }
 0x2ff   :  { %v177_v27 = vpop.xlane.xlu1 %176 }
 0x300   :  { %v181_v28 = vsub.f32 %v146_v63, %v177_v27 }
 0x302   :  { %v183_v29 = vmul.f32 1.442695, %v181_v28 }
 0x304   :  { %1889 = vpow2.f32 %v183_v29 }
 0x30a   :  { %v2176_v30 = vpop.eup %1889 }
 0x30b   :  { %v187_v31 = vsel %vm123_vm8, %v2176_v30, 0.0 }
 0x30c   :  { %188 = vadd.xlane.f32.xlu1 %v187_v31 }
 0x314   :  { %v192_v32 = vpop.xlane.xlu2 %191 }
 0x315   :  { %1891 = vrcp.f32 %v192_v32 }
 0x31b   :  { %v1892_v33 = vpop.eup %1891 }
 0x31c   :  { %v196_v34 = vmul.f32 %v1892_v33, %v1886_v8  ;;  %v392_v40 = vpop.permute.xlu2 %391 }
 0x31e   :  { %v198_v35 = vpack.c.bf16 %v196_v34, %v196_v34 }
 0x320   :  { %1681 = vmatmul.msk.bf16.vlgmr.msrb.gmra.mxu1 %vm123_vm8, %v198_v35 }
 0x324   :  { %v328_v36 = vpop.xlane.xlu0 %327 }
 0x325   :  { %1893 = vrcp.f32 %v328_v36 }
 0x32b   :  { %v1894_v37 = vpop.eup %1893 }
 0x32c   :  { %v332_v38 = vmul.f32 %v1894_v37, %v1888_v16 }
 0x32e   :  { %v334_v39 = vpack.c.bf16 %v332_v38, %v332_v38 }
 0x330   :  { %1689 = vmatmul.msk.bf16.vlgmr.msrb.gmra.mxu0 %vm123_vm8, %v334_v39  ;;  %1693 = vmatmul.msk.f32.vlgmr.msra.gmra.mxu1 %vm123_vm8, %v392_v40 }
 0x331   :  { %1702 = vmatpush.xpose.msk.msrb.mxu0 %vm123_vm8, %v558_v26 }
 0x337   :  { %v556_v42 = vpop.permute.xlu0 %555 }
 0x340   :  { %1701 = vmatmul.msk.f32.vlgmr.msra.gmra.mxu0 %vm123_vm8, %v528_v25 }
 0x348   :  { %1703 = vmatmul.msk.f32.vlgmr.msrb.gmra.mxu0 %vm123_vm8, %v556_v42 }
 0x34b   :  { %v444_v44 = vpop.f32.mrf.mxu2 }
 0x34c   :  { %v445_v45 = vadd.f32 %v2189_v43, %v444_v44 }
 0x34e   :  { %v450_v46 = vsel %vm123_vm8, %v445_v45, -inf }
 0x34f   :  { %451 = vmax.xlane.f32.xlu0 %v450_v46 }
 0x355   :  { %v313_v47 = vpop.xlane.xlu2 %312 }
 0x356   :  { %v317_v48 = vsub.f32 %v281_v23, %v313_v47 }
 0x358   :  { %v319_v50 = vmul.f32 1.442695, %v317_v48 }
 0x35a   :  { %1895 = vpow2.f32 %v319_v50 }
 0x360   :  { %v2193_v51 = vpop.eup %1895 }
 0x361   :  { %v323_v52 = vsel %vm123_vm8, %v2193_v51, 0.0 }
 0x362   :  { %324 = vadd.xlane.f32.xlu0 %v323_v52 }
 0x37f   :  { %v189_v18 = vpop.xlane.xlu1 %188 }
 0x39d   :  { %v246_v53 = vpop.f32.mrf.mxu1 }
 0x39e   :  { %251 = vst.msk [vmem:[#allocation2 + $0x8] sm:$0xff] %vm123_vm8, %v246_v53 }
 0x3a5   :  { %v248_v55 = vpop.f32.mrf.mxu1 }
 0x3ad   :  { %v2203_v57 = vpop.f32.mrf.mxu0  ;;  %v416_v58 = vpop.f32.mrf.mxu1 }
 0x3ae   :  { %v417_v59 = vadd.f32 %v2201_v56, %v416_v58 }
 0x3b0   :  { %v447_v62 = vsel %vm123_vm8, %v417_v59, -inf }
 0x3b1   :  { %448 = vmax.xlane.f32.xlu2 %v447_v62 }
 0x3b5   :  { %v375_v63 = vpop.f32.mrf.mxu0 }
 0x3bd   :  { %v552_v3 = vpop.f32.mrf.mxu0 }
 0x3be   :  { %v553_v4 = vadd.f32 %v2210_v1, %v552_v3 }
 0x3c0   :  { %v583_v6 = vsel %vm123_vm8, %v553_v4, -inf }
 0x3c1   :  { %584 = vmax.xlane.f32.xlu1 %v583_v6 }
 0x3c2   :  { %v452_v7 = vpop.xlane.xlu0 %451 }
 0x3c3   :  { %v454_v8 = vsub.f32 %v445_v45, %v452_v7 }
 0x3c5   :  { %v457_v10 = vmul.f32 1.442695, %v454_v8  ;;  %v580_v15 = vpop.f32.mrf.mxu0 }
 0x3c6   :  { %v581_v16 = vadd.f32 %v2224_v41, %v580_v15 }
 0x3c7   :  { %1897 = vpow2.f32 %v457_v10 }
 0x3c8   :  { %v586_v17 = vsel %vm123_vm8, %v581_v16, -inf  ;;  %1899 = vrcp.f32 %v189_v18 }
 0x3c9   :  { %204 = vrot.lane.b32.xlu2 %v2216_v11, %s1996_s26 }
 0x3cd   :  { %v1898_v12 = vpop.eup %1897 }
 0x3ce   :  { %v462_v14 = vsel %vm123_vm8, %v1898_v12, 0.0  ;;  %v1900_v23 = vpop.eup %1899 }
 0x3cf   :  { %463 = vadd.xlane.f32.xlu0 %v462_v14  ;;  %v195_v24 = vmul.f32 %v1900_v23, %v2176_v30 }
 0x3d1   :  { %v197_v28 = vpack.c.bf16 %v195_v24, %v195_v24 }
 0x3d5   :  { %v325_v33 = vpop.xlane.xlu0 %324 }
 0x3d7   :  { %587 = vmax.xlane.f32.xlu0 %v586_v17 }
 0x3da   :  { %335 = vrot.lane.b32.xlu1 %v2216_v11, %s1999_s29 }
 0x3e2   :  { %492 = vrot.lane.b32.xlu1 %v2134_v60, %s2001_s25 }
 0x3ea   :  { %471 = vrot.lane.b32.xlu1 %v2216_v11, %s2001_s25 }
 0x3f2   :  { %628 = vrot.lane.b32.xlu1 %v2134_v60, %s2002_s10 }
 0x424   :  { %v449_v19 = vpop.xlane.xlu2 %448 }
 0x425   :  { %v453_v20 = vsub.f32 %v417_v59, %v449_v19 }
 0x427   :  { %v455_v21 = vmul.f32 1.442695, %v453_v20 }
 0x429   :  { %1901 = vpow2.f32 %v455_v21 }
 0x42c   :  { %v205_v25 = vpop.permute.xlu2 %204 }
 0x42d   :  { %v211_v26 = vsel %vm209_vm9, %v205_v25, 0 }
 0x42e   :  { %220 = vmatpush.bf16.msra.mxu3 %v211_v26 }
 0x42f   :  { %v1902_v27 = vpop.eup %1901 }
 0x430   :  { %v459_v29 = vsel %vm123_vm8, %v1902_v27, 0.0 }
 0x431   :  { %460 = vadd.xlane.f32.xlu2 %v459_v29  ;;  %1680 = vmatmul.msk.bf16.vlgmr.msra.gmra.mxu3 %vm123_vm8, %v197_v28 }
 0x434   :  { %v585_v60 = vpop.xlane.xlu1 %584 }
 0x435   :  { %v589_v31 = vsub.f32 %v553_v4, %v585_v60 }
 0x437   :  { %v591_v32 = vmul.f32 1.442695, %v589_v31 }
 0x439   :  { %1903 = vpow2.f32 %v591_v32 }
 0x43a   :  { %1905 = vrcp.f32 %v325_v33  ;;  %v1840_v33 = vld [vmem:[%s2535_s5 + $0x8] sm:$0xff] }
 0x43f   :  { %v1904_v34 = vpop.eup %1903 }
 0x440   :  { %v595_v35 = vsel %vm123_vm8, %v1904_v34, 0.0  ;;  %v1906_v36 = vpop.eup %1905 }
 0x441   :  { %596 = vadd.xlane.f32.xlu0 %v595_v35  ;;  %v331_v38 = vmul.f32 %v1906_v36, %v2193_v51 }
 0x442   :  { %v464_v30 = vpop.xlane.xlu0 %463 }
 0x443   :  { %1907 = vrcp.f32 %v464_v30  ;;  %v333_v45 = vpack.c.bf16 %v331_v38, %v331_v38 }
 0x449   :  { %v1908_v46 = vpop.eup %1907 }
 0x44a   :  { %v588_v37 = vpop.xlane.xlu0 %587  ;;  %v468_v47 = vmul.f32 %v1908_v46, %v1898_v12 }
 0x44b   :  { %v590_v39 = vsub.f32 %v581_v16, %v588_v37 }
 0x44c   :  { %v336_v40 = vpop.permute.xlu1 %335  ;;  %v470_v51 = vpack.c.bf16 %v468_v47, %v468_v47 }
 0x44d   :  { %v593_v42 = vmul.f32 1.442695, %v590_v39  ;;  %v341_v44 = vsel %vm209_vm9, %v336_v40, 0 }
 0x44e   :  { %350 = vmatpush.bf16.msrb.mxu3 %v341_v44 }
 0x44f   :  { %1909 = vpow2.f32 %v593_v42 }
 0x451   :  { %1688 = vmatmul.msk.bf16.vlgmr.msrb.gmra.mxu3 %vm123_vm8, %v333_v45 }
 0x454   :  { %v493_v48 = vpop.permute.xlu1 %492 }
 0x455   :  { %v1910_v50 = vpop.eup %1909  ;;  %v498_v52 = vsel %vm209_vm9, %v493_v48, 0 }
 0x456   :  { %507 = vmatpush.bf16.msra.mxu2 %v498_v52  ;;  %v598_v53 = vsel %vm123_vm8, %v1910_v50, 0.0 }
 0x457   :  { %599 = vadd.xlane.f32.xlu0 %v598_v53  ;;  %v1841_v53 = vld [vmem:[%s2536_s6] sm:$0xff] }
 0x459   :  { %1697 = vmatmul.msk.bf16.vlgmr.msra.gmra.mxu2 %vm123_vm8, %v470_v51  ;;  %v1846_v51 = vld [vmem:[%s2537_s7 + $0x18] sm:$0xff] }
 0x45c   :  { %v472_v55 = vpop.permute.xlu1 %471 }
 0x45d   :  { %v477_v58 = vsel %vm209_vm9, %v472_v55, 0 }
 0x45e   :  { %486 = vmatpush.bf16.msrb.mxu1 %v477_v58 }
 0x462   :  { %688 = vmatpush.bf16.msra.mxu1 %v1840_v33 }
 0x464   :  { %v629_v59 = vpop.permute.xlu1 %628 }
 0x465   :  { %v634_v62 = vsel %vm209_vm9, %v629_v59, 0 }
 0x466   :  { %643 = vmatpush.bf16.msra.mxu0 %v634_v62 }
 0x46b   :  { %607 = vrot.lane.b32.xlu0 %v2216_v11, %s2002_s10 }
 0x473   :  { %381 = vrot.lane.b32.xlu0 %v2203_v57, %s2003_s1 }
 0x4a4   :  { %v461_v63 = vpop.xlane.xlu2 %460 }
 0x4a5   :  { %1911 = vrcp.f32 %v461_v63 }
 0x4ab   :  { %v1912_v3 = vpop.eup %1911 }
 0x4ac   :  { %v467_v4 = vmul.f32 %v1912_v3, %v1902_v27 }
 0x4ae   :  { %v469_v5 = vpack.c.bf16 %v467_v4, %v467_v4 }
 0x4b0   :  { %1696 = vmatmul.msk.bf16.vlgmr.msrb.gmra.mxu1 %vm123_vm8, %v469_v5 }
 0x4b4   :  { %v222_v6 = vpop.f32.mrf.mxu3  ;;  %v597_v8 = vpop.xlane.xlu0 %596 }
 0x4b5   :  { %250 = vst.msk [vmem:[#allocation2] sm:$0xff] %vm123_vm8, %v222_v6 }
 0x4bc   :  { %v224_v7 = vpop.f32.mrf.mxu3 }
 0x4ca   :  { %v600_v9 = vpop.xlane.xlu0 %599 }
 0x4cb   :  { %1913 = vrcp.f32 %v600_v9 }
 0x4cc   :  { %1915 = vrcp.f32 %v597_v8 }
 0x4d1   :  { %v1914_v10 = vpop.eup %1913 }
 0x4d2   :  { %v604_v11 = vmul.f32 %v1914_v10, %v1910_v50  ;;  %v1916_v57 = vpop.eup %1915 }
 0x4d3   :  { %v603_v15 = vmul.f32 %v1916_v57, %v1904_v34  ;;  %v1839_v34 = vld [vmem:[%s2535_s5] sm:$0xff] }
 0x4d4   :  { %v606_v12 = vpack.c.bf16 %v604_v11, %v604_v11  ;;  %v352_v14 = vpop.f32.mrf.mxu3  ;;  %689 = vmatpush.bf16.msra.mxu1 %v1839_v34  ;;  %v1875_v57 = vld [vmem:[%s2533_s3] ss:$0 sm:$0xff] }
 0x4d5   :  { %379 = vrot.lane.b32.xlu1 %v352_v14, %s2003_s1  ;;  %v605_v20 = vpack.c.bf16 %v603_v15, %v603_v15 }
 0x4d6   :  { %1705 = vmatmul.msk.bf16.vlgmr.msra.gmra.mxu0 %vm123_vm8, %v606_v12 }
 0x4dc   :  { %v354_v16 = vpop.f32.mrf.mxu3  ;;  %v509_v17 = vpop.f32.mrf.mxu2 }
 0x4dd   :  { %v608_v18 = vpop.permute.xlu0 %607  ;;  %517 = vrot.lane.b32.xlu0 %v509_v17, %s2004_s11 }
 0x4de   :  { %v613_v19 = vsel %vm209_vm9, %v608_v18, 0 }
 0x4df   :  { %622 = vmatpush.bf16.msra.mxu3 %v613_v19 }
 0x4e2   :  { %1704 = vmatmul.msk.bf16.vlgmr.msra.gmra.mxu3 %vm123_vm8, %v605_v20 }
 0x4e3   :  { %815 = vmatpush.bf16.msrb.mxu3 %v1846_v51 }
 0x4e4   :  { %v511_v21 = vpop.f32.mrf.mxu2 }
 0x4e5   :  { %v382_v23 = vpop.permute.xlu0 %381  ;;  %v1845_v21 = vld [vmem:[%s2537_s7 + $0x10] sm:$0xff] }
 0x4e6   :  { %387 = vst.msk [vmem:[#allocation2 + $0x8] sm:$0xff] %vm385_vm10, %v382_v23  ;;  %v1844_v23 = vld [vmem:[%s2537_s7 + $0x8] sm:$0xff] }
 0x4e7   :  { %816 = vmatpush.bf16.msrb.mxu3 %v1845_v21 }
 0x4eb   :  { %817 = vmatpush.bf16.msrb.mxu3 %v1844_v23 }
 0x52d   :  { %v488_v24 = vpop.f32.mrf.mxu1 }
 0x52e   :  { %515 = vrot.lane.b32.xlu1 %v488_v24, %s2004_s11  ;;  %v1843_v24 = vld [vmem:[%s2537_s7] sm:$0xff] }
 0x52f   :  { %818 = vmatpush.bf16.msrb.mxu3 %v1843_v24 }
 0x535   :  { %v490_v25 = vpop.f32.mrf.mxu1 }
 0x547   :  { %v380_v26 = vpop.permute.xlu1 %379 }
 0x548   :  { %386 = vst.msk [vmem:[#allocation2] sm:$0xff] %vm385_vm10, %v380_v26 }
 0x54f   :  { %v518_v27 = vpop.permute.xlu0 %517 }
 0x550   :  { %523 = vst.msk [vmem:[#allocation2 + $0x8] sm:$0xff] %vm521_vm11, %v518_v27 }
 0x553   :  { %v645_v28 = vpop.f32.mrf.mxu0 }
 0x554   :  { %653 = vrot.lane.b32.xlu1 %v645_v28, %s2005_s12 }
 0x55b   :  { %v647_v29 = vpop.f32.mrf.mxu0 }
 0x565   :  { %v624_v60 = vpop.f32.mrf.mxu3 }
 0x566   :  { %651 = vrot.lane.b32.xlu2 %v624_v60, %s2005_s12 }
 0x56d   :  { %v626_v31 = vpop.f32.mrf.mxu3 }
 0x5a0   :  { %v516_v32 = vpop.permute.xlu1 %515 }
 0x5a1   :  { %522 = vst.msk [vmem:[#allocation2] sm:$0xff] %vm521_vm11, %v516_v32 }
 0x5c0   :  { %v652_v35 = vpop.permute.xlu2 %651 }
 0x5c1   :  { %658 = vst.msk [vmem:[#allocation2] sm:$0xff] %vm657_vm12, %v652_v35 }
 0x5c6   :  { %v654_v30 = vpop.permute.xlu1 %653 }
 0x5c7   :  { %659 = vst.msk [vmem:[#allocation2 + $0x8] sm:$0xff] %vm657_vm12, %v654_v30 }
 0x5c8   :  { %v660_v36 = vld [vmem:[#allocation2] sm:$0xff] }
 0x5ce   :  { %v661_v37 = vld [vmem:[#allocation2 + $0x8] sm:$0xff] }
 0x5cf   :  { %v662_v38 = vpack.c.bf16 %v661_v37, %v660_v36  ;;  %v1848_v37 = vld [vmem:[%s2534_s4 + $0x18] sm:$0xff] }
 0x5d0   :  { %895 = vmatpush.bf16.msrb.mxu0 %v1848_v37 }
 0x5d1   :  { %1714 = vmatmul.msk.bf16.vlgmr.msra.gmra.mxu1 %vm39_vm0, %v662_v38 }
 0x64e   :  { %v691_v39 = vpop.f32.mrf.mxu1 }
 0x64f   :  { %v2277_v40 = vadd.f32 %v691_v39, %v2061_v0  ;;  %v1842_v0 = vld [vmem:[%s2536_s6 + $0x8] sm:$0xff] }
 0x650   :  { %764 = vmatpush.bf16.msrb.mxu2 %v1842_v0 }
 0x651   :  { %v699_v42 = vmul.f32 %v2277_v40, %v2277_v40 }
 0x653   :  { %v701_v44 = vsel %vm39_vm0, %v699_v42, 0.0 }
 0x654   :  { %702 = vadd.xlane.f32.xlu0 %v701_v44  ;;  %765 = vmatpush.bf16.msrb.mxu2 %v1841_v53 }
 0x656   :  { %v693_v45 = vpop.f32.mrf.mxu1 }
 0x657   :  { %v2283_v46 = vadd.f32 %v693_v45, %v2068_v2 }
 0x659   :  { %v700_v47 = vmul.f32 %v2283_v46, %v2283_v46 }
 0x65b   :  { %v704_v48 = vsel %vm39_vm0, %v700_v47, 0.0 }
 0x65c   :  { %705 = vadd.xlane.f32.xlu1 %v704_v48 }
 0x6c7   :  { %v703_v50 = vpop.xlane.xlu0 %702 }
 0x6c8   :  { %v707_v52 = vmul.f32 %v703_v50, %v2077_v13 }
 0x6ca   :  { %v709_v2 = vadd.f32 1e-06, %v707_v52 }
 0x6cc   :  { %1917 = vrsqrt.f32 %v709_v2  ;;  %vm717_vm14 = vweird.f32 %v709_v2 }
 0x6cf   :  { %v706_v55 = vpop.xlane.xlu1 %705 }
 0x6d0   :  { %v708_v58 = vmul.f32 %v706_v55, %v2077_v13 }
 0x6d2   :  { %v1918_v59 = vpop.eup %1917  ;;  %v710_v62 = vadd.f32 1e-06, %v708_v58 }
 0x6d3   :  { %v712_v63 = vmul.f32 %v1918_v59, %v709_v2  ;;  %vm718_vm13 = vweird.f32 %v1918_v59 }
 0x6d4   :  { %1919 = vrsqrt.f32 %v710_v62  ;;  %vm719_vm15 = vmor %vm717_vm14, %vm718_vm13  ;;  %vm727_vm2 = vweird.f32 %v710_v62 }
 0x6d5   :  { %v713_v3 = vmul.f32 %v1918_v59, %v712_v63 }
 0x6d7   :  { %v714_v4 = vmul.f32 0.5, %v713_v3  ;;  %v1876_v3 = vld [vmem:[%s2532_s2 + $0x1] ss:$0 sm:$0xff] }
 0x6d9   :  { %v715_v5 = vsub.f32 1.5, %v714_v4 }
 0x6da   :  { %v1920_v6 = vpop.eup %1919 }
 0x6db   :  { %v722_v7 = vmul.f32 %v1920_v6, %v710_v62  ;;  %v716_v8 = vmul.f32 %v1918_v59, %v715_v5  ;;  %vm728_vm1 = vweird.f32 %v1920_v6 }
 0x6dc   :  { %vm729_vm3 = vmor %vm727_vm2, %vm728_vm1 }
 0x6dd   :  { %v723_v9 = vmul.f32 %v1920_v6, %v722_v7  ;;  %v720_v11 = vsel %vm719_vm15, %v1918_v59, %v716_v8 }
 0x6de   :  { %v731_v15 = vmul.f32 %v720_v11, %v2277_v40 }
 0x6df   :  { %v724_v10 = vmul.f32 0.5, %v723_v9 }
 0x6e0   :  { %v736_v18 = vmul.f32 %v1875_v57, %v731_v15 }
 0x6e1   :  { %v725_v12 = vsub.f32 1.5, %v724_v10 }
 0x6e3   :  { %v726_v14 = vmul.f32 %v1920_v6, %v725_v12 }
 0x6e5   :  { %v730_v16 = vsel %vm729_vm3, %v1920_v6, %v726_v14 }
 0x6e6   :  { %v732_v17 = vmul.f32 %v730_v16, %v2283_v46 }
 0x6e8   :  { %v737_v19 = vmul.f32 %v1875_v57, %v732_v17 }
 0x6ea   :  { %v738_v20 = vpack.c.bf16 %v737_v19, %v736_v18 }
 0x6ec   :  { %1723 = vmatmul.msk.bf16.vlgmr.msrb.gmra.mxu2 %vm39_vm0, %v738_v20 }
 0x76f   :  { %v767_v25 = vpop.f32.mrf.mxu2 }
 0x770   :  { %v772_v27 = vmax.f32 %v767_v25, 0.0 }
 0x777   :  { %v769_v26 = vpop.f32.mrf.mxu2 }
 0x778   :  { %v773_v28 = vmax.f32 %v769_v26, 0.0 }
 0x77a   :  { %v774_v29 = vpack.c.bf16 %v773_v28, %v772_v27 }
 0x77c   :  { %1740 = vmatmul.msk.bf16.vlgmr.msrb.gmra.mxu3 %vm807_vm4, %v774_v29 }
 0x7ff   :  { %v820_v60 = vpop.f32.mrf.mxu3 }
 0x800   :  { %v2316_v31 = vadd.f32 %v820_v60, %v2277_v40  ;;  %v1847_v40 = vld [vmem:[%s2534_s4 + $0x10] sm:$0xff] }
 0x801   :  { %896 = vmatpush.bf16.msrb.mxu0 %v1847_v40 }
 0x802   :  { %v829_v32 = vmul.f32 %v2316_v31, %v2316_v31 }
 0x804   :  { %v831_v33 = vsel %vm39_vm0, %v829_v32, 0.0 }
 0x805   :  { %832 = vadd.xlane.f32.xlu2 %v831_v33 }
 0x807   :  { %v822_v34 = vpop.f32.mrf.mxu3 }
 0x808   :  { %v2322_v35 = vadd.f32 %v822_v34, %v2283_v46 }
 0x80a   :  { %v830_v30 = vmul.f32 %v2322_v35, %v2322_v35 }
 0x80c   :  { %v834_v36 = vsel %vm39_vm0, %v830_v30, 0.0 }
 0x80d   :  { %835 = vadd.xlane.f32.xlu0 %v834_v36 }
 0x878   :  { %v833_v38 = vpop.xlane.xlu2 %832 }
 0x879   :  { %v837_v39 = vmul.f32 %v833_v38, %v2077_v13 }
 0x87b   :  { %v839_v42 = vadd.f32 1e-06, %v837_v39 }
 0x87d   :  { %1921 = vrsqrt.f32 %v839_v42  ;;  %vm847_vm6 = vweird.f32 %v839_v42 }
 0x880   :  { %v836_v44 = vpop.xlane.xlu0 %835 }
 0x881   :  { %v838_v45 = vmul.f32 %v836_v44, %v2077_v13 }
 0x883   :  { %v1922_v46 = vpop.eup %1921  ;;  %v840_v47 = vadd.f32 1e-06, %v838_v45 }
 0x884   :  { %v842_v48 = vmul.f32 %v1922_v46, %v839_v42  ;;  %vm848_vm5 = vweird.f32 %v1922_v46 }
 0x885   :  { %1923 = vrsqrt.f32 %v840_v47  ;;  %vm849_vm7 = vmor %vm847_vm6, %vm848_vm5  ;;  %vm857_vm14 = vweird.f32 %v840_v47 }
 0x886   :  { %v843_v0 = vmul.f32 %v1922_v46, %v842_v48 }
 0x888   :  { %v844_v50 = vmul.f32 0.5, %v843_v0 }
 0x88a   :  { %v845_v52 = vsub.f32 1.5, %v844_v50 }
 0x88b   :  { %v1924_v53 = vpop.eup %1923 }
 0x88c   :  { %v852_v2 = vmul.f32 %v1924_v53, %v840_v47  ;;  %v846_v51 = vmul.f32 %v1922_v46, %v845_v52  ;;  %vm858_vm13 = vweird.f32 %v1924_v53 }
 0x88d   :  { %vm859_vm15 = vmor %vm857_vm14, %vm858_vm13 }
 0x88e   :  { %v853_v55 = vmul.f32 %v1924_v53, %v852_v2  ;;  %v850_v59 = vsel %vm849_vm7, %v1922_v46, %v846_v51 }
 0x88f   :  { %v861_v4 = vmul.f32 %v850_v59, %v2316_v31 }
 0x890   :  { %v854_v58 = vmul.f32 0.5, %v853_v55 }
 0x891   :  { %v866_v7 = vmul.f32 %v1876_v3, %v861_v4 }
 0x892   :  { %v855_v62 = vsub.f32 1.5, %v854_v58 }
 0x894   :  { %v856_v63 = vmul.f32 %v1924_v53, %v855_v62 }
 0x896   :  { %v860_v5 = vsel %vm859_vm15, %v1924_v53, %v856_v63 }
 0x897   :  { %v862_v6 = vmul.f32 %v860_v5, %v2322_v35 }
 0x899   :  { %v867_v8 = vmul.f32 %v1876_v3, %v862_v6 }
 0x89b   :  { %v868_v9 = vpack.c.bf16 %v867_v8, %v866_v7 }
 0x89d   :  { %1754 = vmatmul.msk.bf16.vlgmr.msrb.gmra.mxu0 %vm39_vm0, %v868_v9 }
 0x91a   :  { %v2341_v10 = vpop.f32.mrf.mxu0 }
 0x91b   :  { %1037 = vrot.lane.b32.xlu2 %v2341_v10, %s1992_s18  ;;  %1039 = vrot.lane.b32.xlu0 %v2341_v10, %s1993_s19 }
 0x922   :  { %v2347_v11 = vpop.f32.mrf.mxu0 }
 0x923   :  { %906 = vrot.lane.b32.xlu0 %v2341_v10, %s1994_s20  ;;  %933 = vrot.lane.b32.xlu1 %v2347_v11, %s1994_s20 }
 0x92b   :  { %1065 = vrot.lane.b32.xlu0 %v2347_v11, %s1992_s18  ;;  %1067 = vrot.lane.b32.xlu1 %v2347_v11, %s1993_s19 }
 0x975   :  { %v1038_v14 = vpop.permute.xlu2 %1037 }
 0x98d   :  { %v1040_v12 = vpop.permute.xlu0 %1039 }
 0x98e   :  { %1763 = vmatpush.xpose.msk.msra.mxu3 %vm123_vm8, %v1040_v12 }
 0x991   :  { %1764 = vmatmul.msk.f32.vlgmr.msra.gmra.mxu3 %vm123_vm8, %v1038_v14 }
 0x995   :  { %v907_v57 = vpop.permute.xlu0 %906  ;;  %v934_v15 = vpop.permute.xlu1 %933 }
 0x996   :  { %1755 = vmatpush.xpose.msk.msrb.mxu1 %vm123_vm8, %v907_v57  ;;  %1757 = vmatpush.xpose.msk.msra.mxu2 %vm123_vm8, %v934_v15 }
 0x999   :  { %1756 = vmatmul.msk.f32.vlgmr.msrb.gmra.mxu1 %vm123_vm8, %v2341_v10  ;;  %1758 = vmatmul.msk.f32.vlgmr.msra.gmra.mxu2 %vm123_vm8, %v2347_v11 }
 0x99d   :  { %v1068_v16 = vpop.permute.xlu1 %1067  ;;  %v1066_v17 = vpop.permute.xlu0 %1065 }
 0x99e   :  { %1765 = vmatpush.xpose.msk.msra.mxu0 %vm123_vm8, %v1068_v16 }
 0x9a1   :  { %1766 = vmatmul.msk.f32.vlgmr.msra.gmra.mxu0 %vm123_vm8, %v1066_v17 }
 0xa14   :  { %v1062_v18 = vpop.f32.mrf.mxu3 }
 0xa15   :  { %v1063_v19 = vadd.f32 %v2172_v22, %v1062_v18  ;;  %v983_v22 = vpack.c.bf16 %v2341_v10, %v2341_v10 }
 0xa16   :  { %v929_v20 = vpop.f32.mrf.mxu1 }
 0xa17   :  { %v930_v21 = vadd.f32 %v929_v20, %v2153_v61  ;;  %v1093_v23 = vsel %vm123_vm8, %v1063_v19, -inf  ;;  %v986_v60 = vunpack.c.l.b16 %v983_v22 }
 0xa18   :  { %1094 = vmax.xlane.f32.xlu2 %v1093_v23 }
 0xa19   :  { %v959_v24 = vsel %vm123_vm8, %v930_v21, -inf  ;;  %v2377_v32 = vpack.c.b16 %v986_v60, %v986_v60 }
 0xa1a   :  { %960 = vmax.xlane.f32.xlu0 %v959_v24 }
 0xa1c   :  { %v956_v25 = vpop.f32.mrf.mxu2 }
 0xa1d   :  { %v957_v26 = vadd.f32 %v956_v25, %v2121_v49  ;;  %v984_v49 = vpack.c.bf16 %v2347_v11, %v2347_v11 }
 0xa1e   :  { %v1090_v28 = vpop.f32.mrf.mxu0 }
 0xa1f   :  { %v962_v27 = vsel %vm123_vm8, %v957_v26, -inf  ;;  %v1091_v29 = vadd.f32 %v2128_v54, %v1090_v28  ;;  %v1010_v54 = vunpack.c.l.b16 %v984_v49 }
 0xa20   :  { %963 = vmax.xlane.f32.xlu1 %v962_v27 }
 0xa21   :  { %v1096_v61 = vsel %vm123_vm8, %v1091_v29, -inf  ;;  %v2389_v33 = vpack.c.b16 %v1010_v54, %v1010_v54 }
 0xa28   :  { %1097 = vmax.xlane.f32.xlu1 %v1096_v61 }
 0xa2e   :  { %988 = vrot.lane.b32.xlu0 %v2377_v32, %s1996_s26 }
 0xa30   :  { %1117 = vrot.lane.b32.xlu2 %v2377_v32, %s1999_s29 }
 0xa36   :  { %1305 = vrot.lane.b32.xlu0 %v2341_v10, %s2000_s30 }
 0xa38   :  { %1201 = vrot.lane.b32.xlu2 %v2347_v11, %s1998_s28 }
 0xa40   :  { %1199 = vrot.lane.b32.xlu2 %v2347_v11, %s1995_s21 }
 0xa41   :  { %1012 = vrot.lane.b32.xlu1 %v2389_v33, %s1996_s26 }
 0xa49   :  { %1138 = vrot.lane.b32.xlu1 %v2389_v33, %s1999_s29 }
 0xa51   :  { %1307 = vrot.lane.b32.xlu1 %v2341_v10, %s1997_s27 }
 0xa59   :  { %1173 = vrot.lane.b32.xlu1 %v2341_v10, %s1998_s28 }
 0xa61   :  { %1333 = vrot.lane.b32.xlu1 %v2347_v11, %s2000_s30 }
 0xa8b   :  { %v1095_v34 = vpop.xlane.xlu2 %1094 }
 0xa8c   :  { %v1099_v37 = vsub.f32 %v1063_v19, %v1095_v34 }
 0xa8d   :  { %v961_v30 = vpop.xlane.xlu0 %960 }
 0xa8e   :  { %v965_v36 = vsub.f32 %v930_v21, %v961_v30  ;;  %v1101_v39 = vmul.f32 1.442695, %v1099_v37 }
 0xa90   :  { %v967_v38 = vmul.f32 1.442695, %v965_v36 }
 0xa92   :  { %1925 = vpow2.f32 %v967_v38 }
 0xa93   :  { %v1118_v40 = vpop.permute.xlu2 %1117  ;;  %v964_v42 = vpop.xlane.xlu1 %963  ;;  %1927 = vpow2.f32 %v1101_v39 }
 0xa94   :  { %v1123_v44 = vsel %vm209_vm9, %v1118_v40, 0  ;;  %v966_v45 = vsub.f32 %v957_v26, %v964_v42 }
 0xa95   :  { %1132 = vmatpush.bf16.msrb.mxu3 %v1123_v44 }
 0xa96   :  { %v969_v46 = vmul.f32 1.442695, %v966_v45 }
 0xa98   :  { %v1926_v47 = vpop.eup %1925  ;;  %1929 = vpow2.f32 %v969_v46 }
 0xa99   :  { %v971_v48 = vsel %vm123_vm8, %v1926_v47, 0.0  ;;  %v1928_v52 = vpop.eup %1927 }
 0xa9a   :  { %972 = vadd.xlane.f32.xlu0 %v971_v48  ;;  %v1105_v59 = vsel %vm123_vm8, %v1928_v52, 0.0 }
 0xa9b   :  { %v1098_v0 = vpop.xlane.xlu1 %1097  ;;  %v1202_v5 = vpop.permute.xlu2 %1201 }
 0xa9c   :  { %v1100_v50 = vsub.f32 %v1091_v29, %v1098_v0 }
 0xa9e   :  { %v1930_v53 = vpop.eup %1929  ;;  %v1103_v2 = vmul.f32 1.442695, %v1100_v50 }
 0xa9f   :  { %v974_v51 = vsel %vm123_vm8, %v1930_v53, 0.0 }
 0xaa0   :  { %1931 = vpow2.f32 %v1103_v2  ;;  %v989_v55 = vpop.permute.xlu0 %988  ;;  %975 = vadd.xlane.f32.xlu2 %v974_v51 }
 0xaa1   :  { %v994_v58 = vsel %vm209_vm9, %v989_v55, 0 }
 0xaa2   :  { %1106 = vadd.xlane.f32.xlu0 %v1105_v59  ;;  %1003 = vmatpush.bf16.msra.mxu1 %v994_v58 }
 0xaa3   :  { %v1200_v14 = vpop.permute.xlu2 %1199 }
 0xaa6   :  { %v1932_v62 = vpop.eup %1931 }
 0xaa7   :  { %v1108_v63 = vsel %vm123_vm8, %v1932_v62, 0.0 }
 0xaa8   :  { %v1306_v12 = vpop.permute.xlu0 %1305 }
 0xaaa   :  { %1109 = vadd.xlane.f32.xlu0 %v1108_v63 }
 0xab3   :  { %v1013_v3 = vpop.permute.xlu1 %1012 }
 0xab4   :  { %v1018_v4 = vsel %vm209_vm9, %v1013_v3, 0 }
 0xab5   :  { %1027 = vmatpush.bf16.msrb.mxu2 %v1018_v4 }
 0xab8   :  { %1335 = vrot.lane.b32.xlu2 %v2347_v11, %s1997_s27 }
 0xab9   :  { %1773 = vmatpush.xpose.msk.msra.mxu2 %vm123_vm8, %v1202_v5 }
 0xabb   :  { %v1139_v6 = vpop.permute.xlu1 %1138 }
 0xabc   :  { %v1144_v7 = vsel %vm209_vm9, %v1139_v6, 0 }
 0xabd   :  { %1153 = vmatpush.bf16.msrb.mxu0 %v1144_v7 }
 0xabe   :  { %1171 = vrot.lane.b32.xlu0 %v2341_v10, %s1995_s21 }
 0xac3   :  { %v1308_v8 = vpop.permute.xlu1 %1307 }
 0xac4   :  { %1779 = vmatpush.xpose.msk.msra.mxu3 %vm123_vm8, %v1308_v8 }
 0xacb   :  { %v1174_v9 = vpop.permute.xlu1 %1173 }
 0xacc   :  { %1771 = vmatpush.xpose.msk.msrb.mxu1 %vm123_vm8, %v1174_v9 }
 0xad3   :  { %v1334_v61 = vpop.permute.xlu1 %1333 }
 0xb0d   :  { %v973_v57 = vpop.xlane.xlu0 %972 }
 0xb0e   :  { %1933 = vrcp.f32 %v973_v57 }
 0xb13   :  { %v976_v15 = vpop.xlane.xlu2 %975 }
 0xb14   :  { %v1934_v16 = vpop.eup %1933  ;;  %1935 = vrcp.f32 %v976_v15 }
 0xb15   :  { %v979_v11 = vmul.f32 %v1934_v16, %v1926_v47  ;;  %v1107_v17 = vpop.xlane.xlu0 %1106 }
 0xb16   :  { %1937 = vrcp.f32 %v1107_v17 }
 0xb17   :  { %v981_v18 = vpack.c.bf16 %v979_v11, %v979_v11 }
 0xb19   :  { %1759 = vmatmul.msk.bf16.vlgmr.msra.gmra.mxu1 %vm123_vm8, %v981_v18 }
 0xb1a   :  { %v1936_v10 = vpop.eup %1935 }
 0xb1b   :  { %v980_v19 = vmul.f32 %v1936_v10, %v1930_v53  ;;  %v1336_v20 = vpop.permute.xlu2 %1335 }
 0xb1c   :  { %v1938_v21 = vpop.eup %1937  ;;  %1781 = vmatpush.xpose.msk.msra.mxu0 %vm123_vm8, %v1336_v20 }
 0xb1d   :  { %v982_v23 = vpack.c.bf16 %v980_v19, %v980_v19  ;;  %v1113_v24 = vmul.f32 %v1938_v21, %v1928_v52  ;;  %v1110_v25 = vpop.xlane.xlu0 %1109 }
 0xb1e   :  { %1939 = vrcp.f32 %v1110_v25 }
 0xb1f   :  { %v1115_v26 = vpack.c.bf16 %v1113_v24, %v1113_v24  ;;  %1760 = vmatmul.msk.bf16.vlgmr.msrb.gmra.mxu2 %vm123_vm8, %v982_v23 }
 0xb21   :  { %1767 = vmatmul.msk.bf16.vlgmr.msrb.gmra.mxu3 %vm123_vm8, %v1115_v26 }
 0xb24   :  { %v1940_v27 = vpop.eup %1939 }
 0xb25   :  { %v1114_v28 = vmul.f32 %v1940_v27, %v1932_v62 }
 0xb27   :  { %v1116_v29 = vpack.c.bf16 %v1114_v28, %v1114_v28 }
 0xb29   :  { %1768 = vmatmul.msk.bf16.vlgmr.msrb.gmra.mxu0 %vm123_vm8, %v1116_v29 }
 0xb2f   :  { %1774 = vmatmul.msk.f32.vlgmr.msra.gmra.mxu2 %vm123_vm8, %v1200_v14 }
 0xb30   :  { %v1172_v22 = vpop.permute.xlu0 %1171 }
 0xb31   :  { %1772 = vmatmul.msk.f32.vlgmr.msrb.gmra.mxu1 %vm123_vm8, %v1172_v22  ;;  %1780 = vmatmul.msk.f32.vlgmr.msra.gmra.mxu3 %vm123_vm8, %v1306_v12 }
 0xb39   :  { %1782 = vmatmul.msk.f32.vlgmr.msra.gmra.mxu0 %vm123_vm8, %v1334_v61 }
 0xb96   :  { %v1005_v60 = vpop.f32.mrf.mxu1 }
 0xb97   :  { %1033 = vst.msk [vmem:[#allocation2] sm:$0xff] %vm123_vm8, %v1005_v60 }
 0xb9e   :  { %v1007_v49 = vpop.f32.mrf.mxu1 }
 0xba2   :  { %v1029_v54 = vpop.f32.mrf.mxu2 }
 0xba3   :  { %1034 = vst.msk [vmem:[#allocation2 + $0x8] sm:$0xff] %vm123_vm8, %v1029_v54 }
 0xba4   :  { %v1134_v34 = vpop.f32.mrf.mxu3 }
 0xba6   :  { %v1155_v30 = vpop.f32.mrf.mxu0 }
 0xbaa   :  { %v1031_v36 = vpop.f32.mrf.mxu2 }
 0xbac   :  { %v1136_v37 = vpop.f32.mrf.mxu3 }
 0xbae   :  { %v1157_v38 = vpop.f32.mrf.mxu0  ;;  %v1196_v39 = vpop.f32.mrf.mxu1 }
 0xbaf   :  { %v1197_v40 = vadd.f32 %v2201_v56, %v1196_v39 }
 0xbb1   :  { %v1227_v42 = vsel %vm123_vm8, %v1197_v40, -inf }
 0xbb2   :  { %v1224_v44 = vpop.f32.mrf.mxu2  ;;  %1228 = vmax.xlane.f32.xlu1 %v1227_v42 }
 0xbb3   :  { %v1225_v45 = vadd.f32 %v2189_v43, %v1224_v44 }
 0xbb4   :  { %v1330_v46 = vpop.f32.mrf.mxu3 }
 0xbb5   :  { %v1331_v47 = vadd.f32 %v2210_v1, %v1330_v46  ;;  %v1230_v48 = vsel %vm123_vm8, %v1225_v45, -inf  ;;  %v1850_v46 = vld [vmem:[%s2535_s5 + $0x18] sm:$0xff] }
 0xbb6   :  { %1231 = vmax.xlane.f32.xlu2 %v1230_v48  ;;  %v1358_v0 = vpop.f32.mrf.mxu0 }
 0xbb7   :  { %v1361_v50 = vsel %vm123_vm8, %v1331_v47, -inf  ;;  %v1359_v52 = vadd.f32 %v2224_v41, %v1358_v0 }
 0xbb8   :  { %1362 = vmax.xlane.f32.xlu0 %v1361_v50 }
 0xbb9   :  { %v1364_v56 = vsel %vm123_vm8, %v1359_v52, -inf }
 0xbbe   :  { %1365 = vmax.xlane.f32.xlu2 %v1364_v56 }
 0xc25   :  { %v1229_v53 = vpop.xlane.xlu1 %1228 }
 0xc26   :  { %v1233_v2 = vsub.f32 %v1197_v40, %v1229_v53 }
 0xc28   :  { %v1235_v51 = vmul.f32 1.442695, %v1233_v2 }
 0xc29   :  { %v1232_v55 = vpop.xlane.xlu2 %1231 }
 0xc2a   :  { %1941 = vpow2.f32 %v1235_v51  ;;  %v1234_v4 = vsub.f32 %v1225_v45, %v1232_v55 }
 0xc2b   :  { %v1363_v43 = vpop.xlane.xlu0 %1362 }
 0xc2c   :  { %v1367_v58 = vsub.f32 %v1331_v47, %v1363_v43  ;;  %v1237_v7 = vmul.f32 1.442695, %v1234_v4  ;;  %v1849_v47 = vld [vmem:[%s2535_s5 + $0x10] sm:$0xff] }
 0xc2e   :  { %v1369_v1 = vmul.f32 1.442695, %v1367_v58 }
 0xc30   :  { %v1942_v59 = vpop.eup %1941  ;;  %1943 = vpow2.f32 %v1369_v1 }
 0xc31   :  { %v1366_v62 = vpop.xlane.xlu2 %1365  ;;  %v1239_v63 = vsel %vm123_vm8, %v1942_v59, 0.0 }
 0xc32   :  { %v1368_v3 = vsub.f32 %v1359_v52, %v1366_v62  ;;  %1240 = vadd.xlane.f32.xlu2 %v1239_v63 }
 0xc34   :  { %v1371_v41 = vmul.f32 1.442695, %v1368_v3 }
 0xc36   :  { %v1944_v5 = vpop.eup %1943  ;;  %1945 = vpow2.f32 %v1371_v41  ;;  %v1851_v41 = vld [vmem:[%s2536_s6 + $0x10] sm:$0xff] }
 0xc37   :  { %v1373_v6 = vsel %vm123_vm8, %v1944_v5, 0.0  ;;  %1947 = vpow2.f32 %v1237_v7 }
 0xc38   :  { %1374 = vadd.xlane.f32.xlu1 %v1373_v6 }
 0xc3c   :  { %v1946_v8 = vpop.eup %1945 }
 0xc3d   :  { %v1376_v9 = vsel %vm123_vm8, %v1946_v8, 0.0  ;;  %v1948_v12 = vpop.eup %1947 }
 0xc3e   :  { %1377 = vadd.xlane.f32.xlu0 %v1376_v9  ;;  %v1242_v14 = vsel %vm123_vm8, %v1948_v12, 0.0 }
 0xc46   :  { %1243 = vadd.xlane.f32.xlu0 %v1242_v14 }
 0xc4a   :  { %1385 = vrot.lane.b32.xlu2 %v2377_v32, %s2002_s10 }
 0xc51   :  { %1272 = vrot.lane.b32.xlu1 %v2389_v33, %s2001_s25 }
 0xc52   :  { %1406 = vrot.lane.b32.xlu2 %v2389_v33, %s2002_s10 }
 0xc59   :  { %1161 = vrot.lane.b32.xlu1 %v1134_v34, %s2003_s1 }
 0xc5a   :  { %1251 = vrot.lane.b32.xlu0 %v2377_v32, %s2001_s25 }
 0xc62   :  { %1163 = vrot.lane.b32.xlu0 %v1155_v30, %s2003_s1 }
 0xca5   :  { %v1241_v57 = vpop.xlane.xlu2 %1240 }
 0xcab   :  { %v1375_v15 = vpop.xlane.xlu1 %1374 }
 0xcac   :  { %1949 = vrcp.f32 %v1375_v15 }
 0xcad   :  { %v1386_v16 = vpop.permute.xlu2 %1385 }
 0xcae   :  { %v1391_v11 = vsel %vm209_vm9, %v1386_v16, 0 }
 0xcaf   :  { %1400 = vmatpush.bf16.msrb.mxu3 %v1391_v11 }
 0xcb1   :  { %v1378_v17 = vpop.xlane.xlu0 %1377 }
 0xcb2   :  { %v1950_v18 = vpop.eup %1949  ;;  %1951 = vrcp.f32 %v1378_v17 }
 0xcb3   :  { %v1381_v10 = vmul.f32 %v1950_v18, %v1944_v5  ;;  %v1856_v5 = vld [vmem:[%s2537_s7 + $0x38] sm:$0xff] }
 0xcb4   :  { %1595 = vmatpush.bf16.msra.mxu3 %v1856_v5 }
 0xcb5   :  { %v1383_v19 = vpack.c.bf16 %v1381_v10, %v1381_v10  ;;  %v1407_v33 = vpop.permute.xlu2 %1406 }
 0xcb6   :  { %v1412_v20 = vsel %vm209_vm9, %v1407_v33, 0 }
 0xcb7   :  { %1783 = vmatmul.msk.bf16.vlgmr.msrb.gmra.mxu3 %vm123_vm8, %v1383_v19  ;;  %1421 = vmatpush.bf16.msrb.mxu0 %v1412_v20 }
 0xcb8   :  { %v1952_v32 = vpop.eup %1951 }
 0xcb9   :  { %v1382_v21 = vmul.f32 %v1952_v32, %v1946_v8  ;;  %v1244_v23 = vpop.xlane.xlu0 %1243  ;;  %v1877_v32 = vld [vmem:[%s2533_s3 + $0x1] ss:$0 sm:$0xff] }
 0xcba   :  { %1953 = vrcp.f32 %v1244_v23 }
 0xcbb   :  { %v1384_v24 = vpack.c.bf16 %v1382_v21, %v1382_v21  ;;  %1955 = vrcp.f32 %v1241_v57 }
 0xcbd   :  { %1784 = vmatmul.msk.bf16.vlgmr.msrb.gmra.mxu0 %vm123_vm8, %v1384_v24 }
 0xcc0   :  { %v1954_v25 = vpop.eup %1953 }
 0xcc1   :  { %v1248_v26 = vmul.f32 %v1954_v25, %v1948_v12  ;;  %v1956_v22 = vpop.eup %1955 }
 0xcc2   :  { %v1247_v61 = vmul.f32 %v1956_v22, %v1942_v59  ;;  %v1853_v22 = vld [vmem:[%s2537_s7 + $0x20] sm:$0xff] }
 0xcc3   :  { %v1273_v27 = vpop.permute.xlu1 %1272  ;;  %v1250_v29 = vpack.c.bf16 %v1248_v26, %v1248_v26 }
 0xcc4   :  { %v1278_v28 = vsel %vm209_vm9, %v1273_v27, 0  ;;  %v1249_v34 = vpack.c.bf16 %v1247_v61, %v1247_v61 }
 0xcc5   :  { %1287 = vmatpush.bf16.msrb.mxu2 %v1278_v28  ;;  %v1855_v28 = vld [vmem:[%s2537_s7 + $0x30] sm:$0xff] }
 0xcc6   :  { %1596 = vmatpush.bf16.msra.mxu3 %v1855_v28 }
 0xcc8   :  { %1776 = vmatmul.msk.bf16.vlgmr.msrb.gmra.mxu2 %vm123_vm8, %v1250_v29  ;;  %v1854_v29 = vld [vmem:[%s2537_s7 + $0x28] sm:$0xff] }
 0xcca   :  { %1597 = vmatpush.bf16.msra.mxu3 %v1854_v29 }
 0xccb   :  { %v1162_v60 = vpop.permute.xlu1 %1161 }
 0xccc   :  { %1167 = vst.msk [vmem:[#allocation2] sm:$0xff] %vm385_vm10, %v1162_v60  ;;  %v1252_v49 = vpop.permute.xlu0 %1251 }
 0xccd   :  { %v1257_v54 = vsel %vm209_vm9, %v1252_v49, 0 }
 0xcce   :  { %1266 = vmatpush.bf16.msra.mxu1 %v1257_v54  ;;  %1598 = vmatpush.bf16.msra.mxu3 %v1853_v22 }
 0xcd1   :  { %1775 = vmatmul.msk.bf16.vlgmr.msra.gmra.mxu1 %vm123_vm8, %v1249_v34 }
 0xcd2   :  { %1466 = vmatpush.bf16.msrb.mxu1 %v1850_v46 }
 0xcd4   :  { %v1164_v30 = vpop.permute.xlu0 %1163 }
 0xcd5   :  { %1168 = vst.msk [vmem:[#allocation2 + $0x8] sm:$0xff] %vm385_vm10, %v1164_v30 }
 0xcd6   :  { %1467 = vmatpush.bf16.msrb.mxu1 %v1849_v47 }
 0xd3a   :  { %v1402_v36 = vpop.f32.mrf.mxu3  ;;  %v1423_v37 = vpop.f32.mrf.mxu0 }
 0xd3b   :  { %1429 = vrot.lane.b32.xlu0 %v1402_v36, %s2005_s12 }
 0xd42   :  { %v1404_v38 = vpop.f32.mrf.mxu3  ;;  %v1425_v39 = vpop.f32.mrf.mxu0 }
 0xd4b   :  { %v1289_v40 = vpop.f32.mrf.mxu2 }
 0xd4c   :  { %1297 = vrot.lane.b32.xlu1 %v1289_v40, %s2004_s11 }
 0xd4e   :  { %v1268_v42 = vpop.f32.mrf.mxu1 }
 0xd4f   :  { %1295 = vrot.lane.b32.xlu2 %v1268_v42, %s2004_s11 }
 0xd53   :  { %v1291_v44 = vpop.f32.mrf.mxu2 }
 0xd56   :  { %v1270_v45 = vpop.f32.mrf.mxu1 }
 0xd57   :  { %1431 = vrot.lane.b32.xlu2 %v1423_v37, %s2005_s12 }
 0xda9   :  { %v1296_v48 = vpop.permute.xlu2 %1295 }
 0xdaa   :  { %1301 = vst.msk [vmem:[#allocation2] sm:$0xff] %vm521_vm11, %v1296_v48 }
 0xdad   :  { %v1430_v0 = vpop.permute.xlu0 %1429 }
 0xdae   :  { %1435 = vst.msk [vmem:[#allocation2] sm:$0xff] %vm657_vm12, %v1430_v0 }
 0xdb1   :  { %v1432_v52 = vpop.permute.xlu2 %1431 }
 0xdb5   :  { %v1437_v56 = vld [vmem:[#allocation2] sm:$0xff] }
 0xdbe   :  { %v1298_v50 = vpop.permute.xlu1 %1297 }
 0xdbf   :  { %1302 = vst.msk [vmem:[#allocation2 + $0x8] sm:$0xff] %vm521_vm11, %v1298_v50 }
 0xdc0   :  { %1436 = vst.msk [vmem:[#allocation2 + $0x8] sm:$0xff] %vm657_vm12, %v1432_v52 }
 0xdc7   :  { %v1438_v53 = vld [vmem:[#allocation2 + $0x8] sm:$0xff] }
 0xdc8   :  { %v1439_v2 = vpack.c.bf16 %v1438_v53, %v1437_v56 }
 0xdca   :  { %1797 = vmatmul.msk.bf16.vlgmr.msrb.gmra.mxu1 %vm39_vm0, %v1439_v2 }
 0xe47   :  { %v1469_v51 = vpop.f32.mrf.mxu1 }
 0xe48   :  { %v2477_v55 = vadd.f32 %v1469_v51, %v2316_v31  ;;  %v1852_v31 = vld [vmem:[%s2536_s6 + $0x18] sm:$0xff] }
 0xe49   :  { %1544 = vmatpush.bf16.msra.mxu2 %v1852_v31 }
 0xe4a   :  { %v1478_v43 = vmul.f32 %v2477_v55, %v2477_v55 }
 0xe4c   :  { %v1480_v58 = vsel %vm39_vm0, %v1478_v43, 0.0 }
 0xe4d   :  { %1481 = vadd.xlane.f32.xlu1 %v1480_v58  ;;  %1545 = vmatpush.bf16.msra.mxu2 %v1851_v41 }
 0xe4f   :  { %v1471_v1 = vpop.f32.mrf.mxu1 }
 0xe50   :  { %v2483_v59 = vadd.f32 %v1471_v1, %v2322_v35  ;;  %v1878_v1 = vld [vmem:[%s2538_s8] ss:$0 sm:$0xff]  ;;  %s1655_s8 = sshll.u32 %s2539_s9, 4  ;;  %s1656_s8 = int_to_ptr.hbm [resolvable:$true] %s1655_s8 }
 0xe52   :  { %v1479_v62 = vmul.f32 %v2483_v59, %v2483_v59 }
 0xe54   :  { %v1483_v63 = vsel %vm39_vm0, %v1479_v62, 0.0 }
 0xe55   :  { %1484 = vadd.xlane.f32.xlu0 %v1483_v63 }
 0xec0   :  { %v1482_v3 = vpop.xlane.xlu1 %1481 }
 0xec1   :  { %v1486_v4 = vmul.f32 %v1482_v3, %v2077_v13 }
 0xec3   :  { %v1488_v35 = vadd.f32 1e-06, %v1486_v4 }
 0xec5   :  { %1957 = vrsqrt.f32 %v1488_v35  ;;  %vm1496_vm9 = vweird.f32 %v1488_v35 }
 0xec8   :  { %v1485_v6 = vpop.xlane.xlu0 %1484 }
 0xec9   :  { %v1487_v7 = vmul.f32 %v1485_v6, %v2077_v13 }
 0xecb   :  { %v1958_v8 = vpop.eup %1957  ;;  %v1489_v9 = vadd.f32 1e-06, %v1487_v7 }
 0xecc   :  { %v1491_v12 = vmul.f32 %v1958_v8, %v1488_v35  ;;  %vm1497_vm8 = vweird.f32 %v1958_v8 }
 0xecd   :  { %1959 = vrsqrt.f32 %v1489_v9  ;;  %vm1498_vm10 = vmor %vm1496_vm9, %vm1497_vm8  ;;  %vm1506_vm12 = vweird.f32 %v1489_v9 }
 0xece   :  { %v1492_v14 = vmul.f32 %v1958_v8, %v1491_v12 }
 0xed0   :  { %v1493_v57 = vmul.f32 0.5, %v1492_v14 }
 0xed2   :  { %v1494_v15 = vsub.f32 1.5, %v1493_v57 }
 0xed3   :  { %v1960_v16 = vpop.eup %1959 }
 0xed4   :  { %v1501_v11 = vmul.f32 %v1960_v16, %v1489_v9  ;;  %v1495_v17 = vmul.f32 %v1958_v8, %v1494_v15  ;;  %vm1507_vm11 = vweird.f32 %v1960_v16 }
 0xed5   :  { %vm1508_vm1 = vmor %vm1506_vm12, %vm1507_vm11 }
 0xed6   :  { %v1502_v18 = vmul.f32 %v1960_v16, %v1501_v11  ;;  %v1499_v19 = vsel %vm1498_vm10, %v1958_v8, %v1495_v17 }
 0xed7   :  { %v1510_v21 = vmul.f32 %v1499_v19, %v2477_v55 }
 0xed8   :  { %v1503_v10 = vmul.f32 0.5, %v1502_v18 }
 0xed9   :  { %v1515_v25 = vmul.f32 %v1877_v32, %v1510_v21 }
 0xeda   :  { %v1504_v33 = vsub.f32 1.5, %v1503_v10 }
 0xedc   :  { %v1505_v20 = vmul.f32 %v1960_v16, %v1504_v33 }
 0xede   :  { %v1509_v23 = vsel %vm1508_vm1, %v1960_v16, %v1505_v20 }
 0xedf   :  { %v1511_v24 = vmul.f32 %v1509_v23, %v2483_v59 }
 0xee1   :  { %v1516_v26 = vmul.f32 %v1877_v32, %v1511_v24 }
 0xee3   :  { %v1517_v27 = vpack.c.bf16 %v1516_v26, %v1515_v25 }
 0xee5   :  { %1811 = vmatmul.msk.bf16.vlgmr.msra.gmra.mxu2 %vm39_vm0, %v1517_v27 }
 0xf68   :  { %v1547_v61 = vpop.f32.mrf.mxu2 }
 0xf69   :  { %v1552_v49 = vmax.f32 %v1547_v61, 0.0 }
 0xf70   :  { %v1549_v60 = vpop.f32.mrf.mxu2 }
 0xf71   :  { %v1553_v54 = vmax.f32 %v1549_v60, 0.0 }
 0xf73   :  { %v1554_v34 = vpack.c.bf16 %v1553_v54, %v1552_v49 }
 0xf75   :  { %1836 = vmatmul.msk.bf16.vlgmr.msra.gmra.mxu3 %vm807_vm4, %v1554_v34 }
 0xff8   :  { %v1600_v30 = vpop.f32.mrf.mxu3 }
 0xff9   :  { %v1605_v36 = vadd.f32 %v1600_v30, %v2477_v55 }
 0xffb   :  { %v1608_v37 = vmul.f32 %v1605_v36, %v1605_v36 }
 0xffd   :  { %v1610_v38 = vsel %vm39_vm0, %v1608_v37, 0.0 }
 0xffe   :  { %1611 = vadd.xlane.f32.xlu2 %v1610_v38 }
0x1000   :  { %v1602_v39 = vpop.f32.mrf.mxu3 }
0x1001   :  { %v1606_v40 = vadd.f32 %v1602_v39, %v2483_v59 }
0x1003   :  { %v1609_v42 = vmul.f32 %v1606_v40, %v1606_v40 }
0x1005   :  { %v1613_v44 = vsel %vm39_vm0, %v1609_v42, 0.0 }
0x1006   :  { %1614 = vadd.xlane.f32.xlu1 %v1613_v44 }
0x1071   :  { %v1612_v45 = vpop.xlane.xlu2 %1611 }
0x1072   :  { %v1616_v46 = vmul.f32 %v1612_v45, %v2077_v13 }
0x1074   :  { %v1618_v47 = vadd.f32 1e-06, %v1616_v46 }
0x1076   :  { %1961 = vrsqrt.f32 %v1618_v47  ;;  %vm1626_vm3 = vweird.f32 %v1618_v47 }
0x1079   :  { %v1615_v48 = vpop.xlane.xlu1 %1614 }
0x107a   :  { %v1617_v0 = vmul.f32 %v1615_v48, %v2077_v13 }
0x107c   :  { %v1962_v50 = vpop.eup %1961  ;;  %v1619_v52 = vadd.f32 1e-06, %v1617_v0 }
0x107d   :  { %v1621_v56 = vmul.f32 %v1962_v50, %v1618_v47  ;;  %vm1627_vm2 = vweird.f32 %v1962_v50 }
0x107e   :  { %1963 = vrsqrt.f32 %v1619_v52  ;;  %vm1628_vm4 = vmor %vm1626_vm3, %vm1627_vm2  ;;  %vm1636_vm6 = vweird.f32 %v1619_v52 }
0x107f   :  { %v1622_v53 = vmul.f32 %v1962_v50, %v1621_v56 }
0x1081   :  { %v1623_v2 = vmul.f32 0.5, %v1622_v53 }
0x1083   :  { %v1624_v51 = vsub.f32 1.5, %v1623_v2 }
0x1084   :  { %v1964_v55 = vpop.eup %1963 }
0x1085   :  { %v1625_v43 = vmul.f32 %v1962_v50, %v1624_v51  ;;  %v1631_v58 = vmul.f32 %v1964_v55, %v1619_v52  ;;  %vm1637_vm5 = vweird.f32 %v1964_v55 }
0x1086   :  { %vm1638_vm7 = vmor %vm1636_vm6, %vm1637_vm5 }
0x1087   :  { %v1629_v59 = vsel %vm1628_vm4, %v1962_v50, %v1625_v43  ;;  %v1632_v62 = vmul.f32 %v1964_v55, %v1631_v58 }
0x1088   :  { %v1640_v13 = vmul.f32 %v1629_v59, %v1605_v36 }
0x1089   :  { %v1633_v63 = vmul.f32 0.5, %v1632_v62 }
0x108a   :  { %v1645_v31 = vmul.f32 %v1878_v1, %v1640_v13 }
0x108b   :  { %v1634_v3 = vsub.f32 1.5, %v1633_v63 }
0x108c   :  { %1647 = vst.msk [vmem:[#allocation3] sm:$0xff] %vm39_vm0, %v1645_v31 }
0x108d   :  { %v1635_v4 = vmul.f32 %v1964_v55, %v1634_v3 }
0x108f   :  { %v1639_v41 = vsel %vm1638_vm7, %v1964_v55, %v1635_v4 }
0x1090   :  { %v1641_v35 = vmul.f32 %v1639_v41, %v1606_v40 }
0x1092   :  { %v1646_v5 = vmul.f32 %v1878_v1, %v1641_v35 }
0x1094   :  { %1648 = vst.msk [vmem:[#allocation3 + $0x8] sm:$0xff] %vm39_vm0, %v1646_v5 }
0x1095   :  { %1661 = dma.vmem_to_hbm [thread:$0]  %s1654_s24, 256, %s1656_s8, [#allocation4], %s2007_s14, %s2007_s14, %s2003_s1  }
0x1096   :  { %1989 = dma.done.wait [#allocation4], 256  }
0x1097   :  { %1990 = vsyncadd [#allocation4], 4294967040 }
0x1098   :  { %1666 = vsyncpa [#allocation4], 1 }

</bundles_post_ra>
